<compile_context>
chip_gen: v6e
topology: v6e:2x2x1
jax: 0.10.0
libtpu: 0.0.40
codegen_flags: <defaults>
</compile_context>

<pallas_src>
import jax
import jax.numpy as jnp
from jax import lax
from jax.experimental import pallas as pl
from jax.experimental.pallas import tpu as pltpu


def _cbam_kernel(x_ref, w1_ref, b1_ref, w2_ref, b2_ref, wc_ref, bc_ref, o_ref):
    x = x_ref[...]                                     # (Bt, C, L) f32
    Bt, C, L = x.shape
    H = w1_ref.shape[0]

    # ---------------- SE channel attention (batched einsums) ----------------
    # Avg-pool over L with keepdims: channel axis stays on sublanes, so the
    # gate multiply below broadcasts along the minor (lane) dim for free.
    y = jnp.mean(x, axis=2, keepdims=True)             # (Bt, C, 1)
    w1b = jnp.broadcast_to(w1_ref[...], (Bt, H, C))    # leading-dim broadcast (cheap)
    h = jnp.einsum('bhc,bco->bho', w1b, y,
                   preferred_element_type=jnp.float32) + b1_ref[...]
    h = jnp.maximum(h, 0.0)                            # (Bt, H, 1) ReLU
    w2b = jnp.broadcast_to(w2_ref[...], (Bt, C, H))
    s = jnp.einsum('bch,bho->bco', w2b, h,
                   preferred_element_type=jnp.float32) + b2_ref[...]
    s = jax.nn.sigmoid(s)                              # (Bt, C, 1) channel gate
    x_ca = x * s                                       # broadcast along L (minor dim)

    # ---------------- spatial attention (batched over Bt) ----------------
    # Conv1d(2 -> 1, k=7, pad=3) over [avg_over_C, max_over_C], then sigmoid.
    # Channel reductions give (Bt, L) slabs; each of the 7 taps is one
    # lane-roll per slab + a scalar-weighted add, masked for zero padding.
    a2 = jnp.mean(x_ca, axis=1)                        # (Bt, L) avg over channels
    m2 = jnp.max(x_ca, axis=1)                         # (Bt, L) max over channels
    lane = lax.broadcasted_iota(jnp.int32, (1, L), 1)  # (1, L) position index
    acc = jnp.full((Bt, L), bc_ref[0], dtype=jnp.float32)
    for k in range(7):                                 # 7 taps, zero padding
        d = k - 3
        ra = pltpu.roll(a2, shift=(-d) % L, axis=1)    # ra[b,l] = a2[b,(l+d)%L]
        rm = pltpu.roll(m2, shift=(-d) % L, axis=1)
        valid = jnp.logical_and(lane + d >= 0, lane + d < L)
        tap = wc_ref[0, k] * ra + wc_ref[1, k] * rm    # scalar weights from SMEM
        acc = acc + jnp.where(valid, tap, 0.0)         # single masked add per tap
    att = jax.nn.sigmoid(acc)                          # (Bt, L) spatial gate

    # Apply the gate and store.  Per-sample (C, L)*(1, L) sublane broadcast and
    # a lane-dense (C, L) store; only 2 ops per sample, so the tiny unroll is
    # negligible and avoids any (Bt, L) -> (Bt, 1, L) relayout.
    for b in range(Bt):
        o_ref[b] = x_ca[b] * att[b:b + 1, :]


def _pick_block_batch(batch, bytes_per_sample, target_bytes=1 << 20):
    """Largest divisor of `batch` whose x-block stays <= target_bytes while
    keeping >= 2 grid steps (so both v7x TensorCores get work)."""
    best = 1
    for bt in range(1, batch + 1):
        if batch % bt:
            continue
        if bt * bytes_per_sample > target_bytes:
            continue
        if batch >= 2 and batch // bt < 2:
            continue
        best = bt
    return best


def cbam_pallas(x, w1, b1, w2, b2, wc, bc):
    """CBAM forward.  x: (B, C, L) f32.  PyTorch parameter shapes:
       w1 (H, C), b1 (H,), w2 (C, H), b2 (C,), wc (1, 2, 7), bc (1,)."""
    B, C, L = x.shape
    H = w1.shape[0]

    bt = _pick_block_batch(B, C * L * 4)
    grid = (B // bt,)

    b1k = b1.reshape(H, 1).astype(jnp.float32)         # column biases (sublane-major)
    b2k = b2.reshape(C, 1).astype(jnp.float32)
    wck = wc.reshape(2, 7).astype(jnp.float32)          # SMEM scalars
    bck = bc.reshape(1).astype(jnp.float32)

    def rep(shape):
        # small weight slab, same block every step (DMA'd once, then reused)
        return pl.BlockSpec(shape, lambda i: (0,) * len(shape))

    smem = pl.BlockSpec(memory_space=pltpu.MemorySpace.SMEM)

    cost = pl.CostEstimate(
        flops=int(6 * B * C * L + 4 * B * C * H + 30 * B * L),
        transcendentals=int(B * (C + L)),
        bytes_accessed=int(2 * B * C * L * 4),
    )

    # TODO(synk): for production C*L where a (bt, C, L) block would exceed the
    # scoped VMEM limit (notably v7x's 64 MiB), tile over L with a 3-element
    # halo for the conv and a two-pass mean for the channel attention.
    return pl.pallas_call(
        _cbam_kernel,
        out_shape=jax.ShapeDtypeStruct((B, C, L), jnp.float32),
        grid_spec=pltpu.PrefetchScalarGridSpec(
            num_scalar_prefetch=0,
            grid=grid,
            in_specs=[
                pl.BlockSpec((bt, C, L), lambda i: (i, 0, 0)),   # x
                rep((H, C)),                                     # fc1 weight
                rep((H, 1)),                                     # fc1 bias (column)
                rep((C, H)),                                     # fc2 weight
                rep((C, 1)),                                     # fc2 bias (column)
                smem,                                            # conv weight (2, 7)
                smem,                                            # conv bias (1,)
            ],
            out_specs=pl.BlockSpec((bt, C, L), lambda i: (i, 0, 0)),
        ),
        compiler_params=pltpu.CompilerParams(
            dimension_semantics=("parallel",)),
        cost_estimate=cost,
    )(x, w1, b1k, w2, b2k, wck, bck)


def cbam_ref(x, w1, b1, w2, b2, wc, bc):
    """Pure-JAX reference mirroring the PyTorch forward."""
    B, C, L = x.shape
    y = x.mean(axis=2)                                  # (B, C)
    h = jax.nn.relu(y @ w1.T + b1[None, :])             # (B, H)
    s = jax.nn.sigmoid(h @ w2.T + b2[None, :])          # (B, C)
    x_ca = x * s[:, :, None]
    avg = x_ca.mean(axis=1, keepdims=True)              # (B, 1, L)
    mx = x_ca.max(axis=1, keepdims=True)                # (B, 1, L)
    y2 = jnp.concatenate([avg, mx], axis=1)             # (B, 2, L)
    yp = jnp.pad(y2, ((0, 0), (0, 0), (3, 3)))
    out = jnp.zeros((B, 1, L), jnp.float32)
    w = wc.reshape(2, 7)
    for k in range(7):
        out = out + jnp.sum(w[None, :, k:k + 1] * yp[:, :, k:k + L],
                            axis=1, keepdims=True)
    att = jax.nn.sigmoid(out + bc.reshape(1, 1, 1))
    return x_ca * att


if __name__ == "__main__":
    B, C, L = 8, 32, 128          # channels=32, reduction=16 -> hidden=2
    H = C // 16

    key = jax.random.PRNGKey(0)
    kx, k1, k2, k3, k4, k5, k6 = jax.random.split(key, 7)
    x = jax.random.normal(kx, (B, C, L), dtype=jnp.float32)

    # deterministic synthetic parameters (PyTorch shapes)
    w1 = 0.1 * jax.random.normal(k1, (H, C), dtype=jnp.float32)     # fc1.weight
    b1 = 0.1 * jax.random.normal(k2, (H,), dtype=jnp.float32)       # fc1.bias
    w2 = 0.1 * jax.random.normal(k3, (C, H), dtype=jnp.float32)     # fc2.weight
    b2 = 0.1 * jax.random.normal(k4, (C,), dtype=jnp.float32)       # fc2.bias
    wc = 0.1 * jax.random.normal(k5, (1, 2, 7), dtype=jnp.float32)  # conv1d.weight
    bc = 0.1 * jax.random.normal(k6, (1,), dtype=jnp.float32)       # conv1d.bias

    out = cbam_pallas(x, w1, b1, w2, b2, wc, bc)
    out = jax.block_until_ready(out)

    ref = cbam_ref(x, w1, b1, w2, b2, wc, bc)
    assert out.shape == (B, C, L)
    assert jnp.allclose(out, ref, atol=1e-5, rtol=1e-5), "mismatch vs JAX reference"

    print("KERNEL_OK")
</pallas_src>

<mosaic_0001>
module attributes {stable_mosaic.version = 11 : i64} {
  func.func @_cbam_kernel(%arg0: i32, %arg1: memref<4x32x128xf32, #tpu.memory_space<vmem>>, %arg2: memref<2x32xf32, #tpu.memory_space<vmem>>, %arg3: memref<2x1xf32, #tpu.memory_space<vmem>>, %arg4: memref<32x2xf32, #tpu.memory_space<vmem>>, %arg5: memref<32x1xf32, #tpu.memory_space<vmem>>, %arg6: memref<2x7xf32, #tpu.memory_space<smem>>, %arg7: memref<1xf32, #tpu.memory_space<smem>>, %arg8: memref<4x32x128xf32, #tpu.memory_space<vmem>>) attributes {dimension_semantics = [#tpu.dimension_semantics<parallel>], iteration_bounds = array<i64: 2>, scalar_prefetch = 0 : i64, scratch_operands = 0 : i64, tpu.core_type = #tpu.core_type<tc>, window_params = [{transform_indices = @transform_0, window_bounds = array<i64: 4, 32, 128>}, {pipeline_mode = #tpu.pipeline_mode<synchronous>, transform_indices = @transform_1, window_bounds = array<i64: 2, 32>}, {pipeline_mode = #tpu.pipeline_mode<synchronous>, transform_indices = @transform_2, window_bounds = array<i64: 2, 1>}, {pipeline_mode = #tpu.pipeline_mode<synchronous>, transform_indices = @transform_3, window_bounds = array<i64: 32, 2>}, {pipeline_mode = #tpu.pipeline_mode<synchronous>, transform_indices = @transform_4, window_bounds = array<i64: 32, 1>}, {transform_indices = @transform_5, window_bounds = array<i64: 2, 7>}, {transform_indices = @transform_6, window_bounds = array<i64: 1>}, {transform_indices = @transform_7, window_bounds = array<i64: 4, 32, 128>}]} {
    %c0 = arith.constant 0 : index
    %c0_0 = arith.constant 0 : index
    %c0_1 = arith.constant 0 : index
    %0 = vector.load %arg1[%c0, %c0_0, %c0_1] : memref<4x32x128xf32, #tpu.memory_space<vmem>>, vector<4x32x128xf32>
    %cst = arith.constant dense<0.000000e+00> : vector<4x32xf32>
    %1 = vector.multi_reduction <add>, %0, %cst [2] : vector<4x32x128xf32> to vector<4x32xf32>
    %2 = vector.shape_cast %1 : vector<4x32xf32> to vector<4x32x1xf32>
    %cst_2 = arith.constant 1.280000e+02 : f32
    %3 = vector.broadcast %cst_2 : f32 to vector<4x32x1xf32>
    %4 = arith.divf %2, %3 : vector<4x32x1xf32>
    %c0_3 = arith.constant 0 : index
    %c0_4 = arith.constant 0 : index
    %5 = vector.load %arg2[%c0_3, %c0_4] : memref<2x32xf32, #tpu.memory_space<vmem>>, vector<2x32xf32>
    %6 = vector.shape_cast %5 : vector<2x32xf32> to vector<1x2x32xf32>
    %7 = vector.broadcast %6 : vector<1x2x32xf32> to vector<4x2x32xf32>
    "tpu.trace_start"() <{level = 10 : i32, message = "bhc,bco->bho"}> : () -> ()
    %cst_5 = arith.constant dense<0.000000e+00> : vector<4x2x1xf32>
    %8 = tpu.matmul %7, %4, %cst_5 {dimension_numbers = #tpu.dot_dimension_numbers<[2], [1], [1], [2], [0, 0, 0, 1, 1, 2], [0], [0]>} : vector<4x2x32xf32>, vector<4x32x1xf32>, vector<4x2x1xf32> -> vector<4x2x1xf32>
    "tpu.trace_stop"() : () -> ()
    %c0_6 = arith.constant 0 : index
    %c0_7 = arith.constant 0 : index
    %9 = vector.load %arg3[%c0_6, %c0_7] : memref<2x1xf32, #tpu.memory_space<vmem>>, vector<2x1xf32>
    %10 = vector.shape_cast %9 : vector<2x1xf32> to vector<1x2x1xf32>
    %11 = vector.broadcast %10 : vector<1x2x1xf32> to vector<4x2x1xf32>
    %12 = arith.addf %8, %11 : vector<4x2x1xf32>
    %cst_8 = arith.constant 0.000000e+00 : f32
    %13 = vector.broadcast %cst_8 : f32 to vector<4x2x1xf32>
    %14 = arith.maximumf %12, %13 : vector<4x2x1xf32>
    %c0_9 = arith.constant 0 : index
    %c0_10 = arith.constant 0 : index
    %15 = vector.load %arg4[%c0_9, %c0_10] : memref<32x2xf32, #tpu.memory_space<vmem>>, vector<32x2xf32>
    %16 = vector.shape_cast %15 : vector<32x2xf32> to vector<1x32x2xf32>
    %17 = vector.broadcast %16 : vector<1x32x2xf32> to vector<4x32x2xf32>
    "tpu.trace_start"() <{level = 10 : i32, message = "bch,bho->bco"}> : () -> ()
    %cst_11 = arith.constant dense<0.000000e+00> : vector<4x32x1xf32>
    %18 = tpu.matmul %17, %14, %cst_11 {dimension_numbers = #tpu.dot_dimension_numbers<[2], [1], [1], [2], [0, 0, 0, 1, 1, 2], [0], [0]>} : vector<4x32x2xf32>, vector<4x2x1xf32>, vector<4x32x1xf32> -> vector<4x32x1xf32>
    "tpu.trace_stop"() : () -> ()
    %c0_12 = arith.constant 0 : index
    %c0_13 = arith.constant 0 : index
    %19 = vector.load %arg5[%c0_12, %c0_13] : memref<32x1xf32, #tpu.memory_space<vmem>>, vector<32x1xf32>
    %20 = vector.shape_cast %19 : vector<32x1xf32> to vector<1x32x1xf32>
    %21 = vector.broadcast %20 : vector<1x32x1xf32> to vector<4x32x1xf32>
    %22 = arith.addf %18, %21 : vector<4x32x1xf32>
    %23 = arith.negf %22 : vector<4x32x1xf32>
    %24 = math.exp %23 : vector<4x32x1xf32>
    %cst_14 = arith.constant 1.000000e+00 : f32
    %25 = vector.broadcast %cst_14 : f32 to vector<4x32x1xf32>
    %26 = arith.addf %25, %24 : vector<4x32x1xf32>
    %27 = arith.divf %25, %26 : vector<4x32x1xf32>
    %28 = vector.broadcast %27 : vector<4x32x1xf32> to vector<4x32x128xf32>
    %29 = arith.mulf %0, %28 : vector<4x32x128xf32>
    %cst_15 = arith.constant dense<0.000000e+00> : vector<4x128xf32>
    %30 = vector.multi_reduction <add>, %29, %cst_15 [1] : vector<4x32x128xf32> to vector<4x128xf32>
    %cst_16 = arith.constant 3.200000e+01 : f32
    %31 = vector.broadcast %cst_16 : f32 to vector<4x128xf32>
    %32 = arith.divf %30, %31 : vector<4x128xf32>
    %cst_17 = arith.constant dense<0xFF800000> : vector<4x128xf32>
    %33 = vector.multi_reduction <maximumf>, %29, %cst_17 [1] : vector<4x32x128xf32> to vector<4x128xf32>
    %34 = tpu.iota {dimensions = array<i32: 1>} : vector<1x128xi32>
    %c0_18 = arith.constant 0 : index
    %35 = memref.load %arg7[%c0_18] : memref<1xf32, #tpu.memory_space<smem>>
    %36 = vector.broadcast %35 : f32 to vector<4x128xf32>
    %c3_i32 = arith.constant 3 : i32
    %37 = tpu.dynamic_rotate %32 by %c3_i32 dim 1 : vector<4x128xf32>, i32 -> vector<4x128xf32>
    %c3_i32_19 = arith.constant 3 : i32
    %38 = tpu.dynamic_rotate %33 by %c3_i32_19 dim 1 : vector<4x128xf32>, i32 -> vector<4x128xf32>
    %c-3_i32 = arith.constant -3 : i32
    %39 = vector.broadcast %c-3_i32 : i32 to vector<1x128xi32>
    %40 = arith.addi %34, %39 : vector<1x128xi32>
    %c0_i32 = arith.constant 0 : i32
    %41 = vector.broadcast %c0_i32 : i32 to vector<1x128xi32>
    %42 = arith.cmpi sge, %40, %41 : vector<1x128xi32>
    %c-3_i32_20 = arith.constant -3 : i32
    %43 = vector.broadcast %c-3_i32_20 : i32 to vector<1x128xi32>
    %44 = arith.addi %34, %43 : vector<1x128xi32>
    %c128_i32 = arith.constant 128 : i32
    %45 = vector.broadcast %c128_i32 : i32 to vector<1x128xi32>
    %46 = arith.cmpi slt, %44, %45 : vector<1x128xi32>
    %47 = arith.andi %42, %46 : vector<1x128xi1>
    %c0_21 = arith.constant 0 : index
    %c0_22 = arith.constant 0 : index
    %48 = memref.load %arg6[%c0_21, %c0_22] : memref<2x7xf32, #tpu.memory_space<smem>>
    %49 = vector.broadcast %48 : f32 to vector<4x128xf32>
    %50 = arith.mulf %49, %37 : vector<4x128xf32>
    %c1 = arith.constant 1 : index
    %c0_23 = arith.constant 0 : index
    %51 = memref.load %arg6[%c1, %c0_23] : memref<2x7xf32, #tpu.memory_space<smem>>
    %52 = vector.broadcast %51 : f32 to vector<4x128xf32>
    %53 = arith.mulf %52, %38 : vector<4x128xf32>
    %54 = arith.addf %50, %53 : vector<4x128xf32>
    %cst_24 = arith.constant 0.000000e+00 : f32
    %55 = vector.shape_cast %47 : vector<1x128xi1> to vector<1x128xi1>
    %56 = vector.broadcast %55 : vector<1x128xi1> to vector<4x128xi1>
    %57 = vector.broadcast %cst_24 : f32 to vector<4x128xf32>
    %58 = arith.select %56, %54, %57 : vector<4x128xi1>, vector<4x128xf32>
    %59 = arith.addf %36, %58 : vector<4x128xf32>
    %c2_i32 = arith.constant 2 : i32
    %60 = tpu.dynamic_rotate %32 by %c2_i32 dim 1 : vector<4x128xf32>, i32 -> vector<4x128xf32>
    %c2_i32_25 = arith.constant 2 : i32
    %61 = tpu.dynamic_rotate %33 by %c2_i32_25 dim 1 : vector<4x128xf32>, i32 -> vector<4x128xf32>
    %c-2_i32 = arith.constant -2 : i32
    %62 = vector.broadcast %c-2_i32 : i32 to vector<1x128xi32>
    %63 = arith.addi %34, %62 : vector<1x128xi32>
    %c0_i32_26 = arith.constant 0 : i32
    %64 = vector.broadcast %c0_i32_26 : i32 to vector<1x128xi32>
    %65 = arith.cmpi sge, %63, %64 : vector<1x128xi32>
    %c-2_i32_27 = arith.constant -2 : i32
    %66 = vector.broadcast %c-2_i32_27 : i32 to vector<1x128xi32>
    %67 = arith.addi %34, %66 : vector<1x128xi32>
    %c128_i32_28 = arith.constant 128 : i32
    %68 = vector.broadcast %c128_i32_28 : i32 to vector<1x128xi32>
    %69 = arith.cmpi slt, %67, %68 : vector<1x128xi32>
    %70 = arith.andi %65, %69 : vector<1x128xi1>
    %c0_29 = arith.constant 0 : index
    %c1_30 = arith.constant 1 : index
    %71 = memref.load %arg6[%c0_29, %c1_30] : memref<2x7xf32, #tpu.memory_space<smem>>
    %72 = vector.broadcast %71 : f32 to vector<4x128xf32>
    %73 = arith.mulf %72, %60 : vector<4x128xf32>
    %c1_31 = arith.constant 1 : index
    %c1_32 = arith.constant 1 : index
    %74 = memref.load %arg6[%c1_31, %c1_32] : memref<2x7xf32, #tpu.memory_space<smem>>
    %75 = vector.broadcast %74 : f32 to vector<4x128xf32>
    %76 = arith.mulf %75, %61 : vector<4x128xf32>
    %77 = arith.addf %73, %76 : vector<4x128xf32>
    %cst_33 = arith.constant 0.000000e+00 : f32
    %78 = vector.shape_cast %70 : vector<1x128xi1> to vector<1x128xi1>
    %79 = vector.broadcast %78 : vector<1x128xi1> to vector<4x128xi1>
    %80 = vector.broadcast %cst_33 : f32 to vector<4x128xf32>
    %81 = arith.select %79, %77, %80 : vector<4x128xi1>, vector<4x128xf32>
    %82 = arith.addf %59, %81 : vector<4x128xf32>
    %c1_i32 = arith.constant 1 : i32
    %83 = tpu.dynamic_rotate %32 by %c1_i32 dim 1 : vector<4x128xf32>, i32 -> vector<4x128xf32>
    %c1_i32_34 = arith.constant 1 : i32
    %84 = tpu.dynamic_rotate %33 by %c1_i32_34 dim 1 : vector<4x128xf32>, i32 -> vector<4x128xf32>
    %c-1_i32 = arith.constant -1 : i32
    %85 = vector.broadcast %c-1_i32 : i32 to vector<1x128xi32>
    %86 = arith.addi %34, %85 : vector<1x128xi32>
    %c0_i32_35 = arith.constant 0 : i32
    %87 = vector.broadcast %c0_i32_35 : i32 to vector<1x128xi32>
    %88 = arith.cmpi sge, %86, %87 : vector<1x128xi32>
    %c-1_i32_36 = arith.constant -1 : i32
    %89 = vector.broadcast %c-1_i32_36 : i32 to vector<1x128xi32>
    %90 = arith.addi %34, %89 : vector<1x128xi32>
    %c128_i32_37 = arith.constant 128 : i32
    %91 = vector.broadcast %c128_i32_37 : i32 to vector<1x128xi32>
    %92 = arith.cmpi slt, %90, %91 : vector<1x128xi32>
    %93 = arith.andi %88, %92 : vector<1x128xi1>
    %c0_38 = arith.constant 0 : index
    %c2 = arith.constant 2 : index
    %94 = memref.load %arg6[%c0_38, %c2] : memref<2x7xf32, #tpu.memory_space<smem>>
    %95 = vector.broadcast %94 : f32 to vector<4x128xf32>
    %96 = arith.mulf %95, %83 : vector<4x128xf32>
    %c1_39 = arith.constant 1 : index
    %c2_40 = arith.constant 2 : index
    %97 = memref.load %arg6[%c1_39, %c2_40] : memref<2x7xf32, #tpu.memory_space<smem>>
    %98 = vector.broadcast %97 : f32 to vector<4x128xf32>
    %99 = arith.mulf %98, %84 : vector<4x128xf32>
    %100 = arith.addf %96, %99 : vector<4x128xf32>
    %cst_41 = arith.constant 0.000000e+00 : f32
    %101 = vector.shape_cast %93 : vector<1x128xi1> to vector<1x128xi1>
    %102 = vector.broadcast %101 : vector<1x128xi1> to vector<4x128xi1>
    %103 = vector.broadcast %cst_41 : f32 to vector<4x128xf32>
    %104 = arith.select %102, %100, %103 : vector<4x128xi1>, vector<4x128xf32>
    %105 = arith.addf %82, %104 : vector<4x128xf32>
    %c0_i32_42 = arith.constant 0 : i32
    %106 = tpu.dynamic_rotate %32 by %c0_i32_42 dim 1 : vector<4x128xf32>, i32 -> vector<4x128xf32>
    %c0_i32_43 = arith.constant 0 : i32
    %107 = tpu.dynamic_rotate %33 by %c0_i32_43 dim 1 : vector<4x128xf32>, i32 -> vector<4x128xf32>
    %c0_i32_44 = arith.constant 0 : i32
    %108 = vector.broadcast %c0_i32_44 : i32 to vector<1x128xi32>
    %109 = arith.addi %34, %108 : vector<1x128xi32>
    %c0_i32_45 = arith.constant 0 : i32
    %110 = vector.broadcast %c0_i32_45 : i32 to vector<1x128xi32>
    %111 = arith.cmpi sge, %109, %110 : vector<1x128xi32>
    %c0_i32_46 = arith.constant 0 : i32
    %112 = vector.broadcast %c0_i32_46 : i32 to vector<1x128xi32>
    %113 = arith.addi %34, %112 : vector<1x128xi32>
    %c128_i32_47 = arith.constant 128 : i32
    %114 = vector.broadcast %c128_i32_47 : i32 to vector<1x128xi32>
    %115 = arith.cmpi slt, %113, %114 : vector<1x128xi32>
    %116 = arith.andi %111, %115 : vector<1x128xi1>
    %c0_48 = arith.constant 0 : index
    %c3 = arith.constant 3 : index
    %117 = memref.load %arg6[%c0_48, %c3] : memref<2x7xf32, #tpu.memory_space<smem>>
    %118 = vector.broadcast %117 : f32 to vector<4x128xf32>
    %119 = arith.mulf %118, %106 : vector<4x128xf32>
    %c1_49 = arith.constant 1 : index
    %c3_50 = arith.constant 3 : index
    %120 = memref.load %arg6[%c1_49, %c3_50] : memref<2x7xf32, #tpu.memory_space<smem>>
    %121 = vector.broadcast %120 : f32 to vector<4x128xf32>
    %122 = arith.mulf %121, %107 : vector<4x128xf32>
    %123 = arith.addf %119, %122 : vector<4x128xf32>
    %cst_51 = arith.constant 0.000000e+00 : f32
    %124 = vector.shape_cast %116 : vector<1x128xi1> to vector<1x128xi1>
    %125 = vector.broadcast %124 : vector<1x128xi1> to vector<4x128xi1>
    %126 = vector.broadcast %cst_51 : f32 to vector<4x128xf32>
    %127 = arith.select %125, %123, %126 : vector<4x128xi1>, vector<4x128xf32>
    %128 = arith.addf %105, %127 : vector<4x128xf32>
    %c127_i32 = arith.constant 127 : i32
    %129 = tpu.dynamic_rotate %32 by %c127_i32 dim 1 : vector<4x128xf32>, i32 -> vector<4x128xf32>
    %c127_i32_52 = arith.constant 127 : i32
    %130 = tpu.dynamic_rotate %33 by %c127_i32_52 dim 1 : vector<4x128xf32>, i32 -> vector<4x128xf32>
    %c1_i32_53 = arith.constant 1 : i32
    %131 = vector.broadcast %c1_i32_53 : i32 to vector<1x128xi32>
    %132 = arith.addi %34, %131 : vector<1x128xi32>
    %c0_i32_54 = arith.constant 0 : i32
    %133 = vector.broadcast %c0_i32_54 : i32 to vector<1x128xi32>
    %134 = arith.cmpi sge, %132, %133 : vector<1x128xi32>
    %c1_i32_55 = arith.constant 1 : i32
    %135 = vector.broadcast %c1_i32_55 : i32 to vector<1x128xi32>
    %136 = arith.addi %34, %135 : vector<1x128xi32>
    %c128_i32_56 = arith.constant 128 : i32
    %137 = vector.broadcast %c128_i32_56 : i32 to vector<1x128xi32>
    %138 = arith.cmpi slt, %136, %137 : vector<1x128xi32>
    %139 = arith.andi %134, %138 : vector<1x128xi1>
    %c0_57 = arith.constant 0 : index
    %c4 = arith.constant 4 : index
    %140 = memref.load %arg6[%c0_57, %c4] : memref<2x7xf32, #tpu.memory_space<smem>>
    %141 = vector.broadcast %140 : f32 to vector<4x128xf32>
    %142 = arith.mulf %141, %129 : vector<4x128xf32>
    %c1_58 = arith.constant 1 : index
    %c4_59 = arith.constant 4 : index
    %143 = memref.load %arg6[%c1_58, %c4_59] : memref<2x7xf32, #tpu.memory_space<smem>>
    %144 = vector.broadcast %143 : f32 to vector<4x128xf32>
    %145 = arith.mulf %144, %130 : vector<4x128xf32>
    %146 = arith.addf %142, %145 : vector<4x128xf32>
    %cst_60 = arith.constant 0.000000e+00 : f32
    %147 = vector.shape_cast %139 : vector<1x128xi1> to vector<1x128xi1>
    %148 = vector.broadcast %147 : vector<1x128xi1> to vector<4x128xi1>
    %149 = vector.broadcast %cst_60 : f32 to vector<4x128xf32>
    %150 = arith.select %148, %146, %149 : vector<4x128xi1>, vector<4x128xf32>
    %151 = arith.addf %128, %150 : vector<4x128xf32>
    %c126_i32 = arith.constant 126 : i32
    %152 = tpu.dynamic_rotate %32 by %c126_i32 dim 1 : vector<4x128xf32>, i32 -> vector<4x128xf32>
    %c126_i32_61 = arith.constant 126 : i32
    %153 = tpu.dynamic_rotate %33 by %c126_i32_61 dim 1 : vector<4x128xf32>, i32 -> vector<4x128xf32>
    %c2_i32_62 = arith.constant 2 : i32
    %154 = vector.broadcast %c2_i32_62 : i32 to vector<1x128xi32>
    %155 = arith.addi %34, %154 : vector<1x128xi32>
    %c0_i32_63 = arith.constant 0 : i32
    %156 = vector.broadcast %c0_i32_63 : i32 to vector<1x128xi32>
    %157 = arith.cmpi sge, %155, %156 : vector<1x128xi32>
    %c2_i32_64 = arith.constant 2 : i32
    %158 = vector.broadcast %c2_i32_64 : i32 to vector<1x128xi32>
    %159 = arith.addi %34, %158 : vector<1x128xi32>
    %c128_i32_65 = arith.constant 128 : i32
    %160 = vector.broadcast %c128_i32_65 : i32 to vector<1x128xi32>
    %161 = arith.cmpi slt, %159, %160 : vector<1x128xi32>
    %162 = arith.andi %157, %161 : vector<1x128xi1>
    %c0_66 = arith.constant 0 : index
    %c5 = arith.constant 5 : index
    %163 = memref.load %arg6[%c0_66, %c5] : memref<2x7xf32, #tpu.memory_space<smem>>
    %164 = vector.broadcast %163 : f32 to vector<4x128xf32>
    %165 = arith.mulf %164, %152 : vector<4x128xf32>
    %c1_67 = arith.constant 1 : index
    %c5_68 = arith.constant 5 : index
    %166 = memref.load %arg6[%c1_67, %c5_68] : memref<2x7xf32, #tpu.memory_space<smem>>
    %167 = vector.broadcast %166 : f32 to vector<4x128xf32>
    %168 = arith.mulf %167, %153 : vector<4x128xf32>
    %169 = arith.addf %165, %168 : vector<4x128xf32>
    %cst_69 = arith.constant 0.000000e+00 : f32
    %170 = vector.shape_cast %162 : vector<1x128xi1> to vector<1x128xi1>
    %171 = vector.broadcast %170 : vector<1x128xi1> to vector<4x128xi1>
    %172 = vector.broadcast %cst_69 : f32 to vector<4x128xf32>
    %173 = arith.select %171, %169, %172 : vector<4x128xi1>, vector<4x128xf32>
    %174 = arith.addf %151, %173 : vector<4x128xf32>
    %c125_i32 = arith.constant 125 : i32
    %175 = tpu.dynamic_rotate %32 by %c125_i32 dim 1 : vector<4x128xf32>, i32 -> vector<4x128xf32>
    %c125_i32_70 = arith.constant 125 : i32
    %176 = tpu.dynamic_rotate %33 by %c125_i32_70 dim 1 : vector<4x128xf32>, i32 -> vector<4x128xf32>
    %c3_i32_71 = arith.constant 3 : i32
    %177 = vector.broadcast %c3_i32_71 : i32 to vector<1x128xi32>
    %178 = arith.addi %34, %177 : vector<1x128xi32>
    %c0_i32_72 = arith.constant 0 : i32
    %179 = vector.broadcast %c0_i32_72 : i32 to vector<1x128xi32>
    %180 = arith.cmpi sge, %178, %179 : vector<1x128xi32>
    %c3_i32_73 = arith.constant 3 : i32
    %181 = vector.broadcast %c3_i32_73 : i32 to vector<1x128xi32>
    %182 = arith.addi %34, %181 : vector<1x128xi32>
    %c128_i32_74 = arith.constant 128 : i32
    %183 = vector.broadcast %c128_i32_74 : i32 to vector<1x128xi32>
    %184 = arith.cmpi slt, %182, %183 : vector<1x128xi32>
    %185 = arith.andi %180, %184 : vector<1x128xi1>
    %c0_75 = arith.constant 0 : index
    %c6 = arith.constant 6 : index
    %186 = memref.load %arg6[%c0_75, %c6] : memref<2x7xf32, #tpu.memory_space<smem>>
    %187 = vector.broadcast %186 : f32 to vector<4x128xf32>
    %188 = arith.mulf %187, %175 : vector<4x128xf32>
    %c1_76 = arith.constant 1 : index
    %c6_77 = arith.constant 6 : index
    %189 = memref.load %arg6[%c1_76, %c6_77] : memref<2x7xf32, #tpu.memory_space<smem>>
    %190 = vector.broadcast %189 : f32 to vector<4x128xf32>
    %191 = arith.mulf %190, %176 : vector<4x128xf32>
    %192 = arith.addf %188, %191 : vector<4x128xf32>
    %cst_78 = arith.constant 0.000000e+00 : f32
    %193 = vector.shape_cast %185 : vector<1x128xi1> to vector<1x128xi1>
    %194 = vector.broadcast %193 : vector<1x128xi1> to vector<4x128xi1>
    %195 = vector.broadcast %cst_78 : f32 to vector<4x128xf32>
    %196 = arith.select %194, %192, %195 : vector<4x128xi1>, vector<4x128xf32>
    %197 = arith.addf %174, %196 : vector<4x128xf32>
    %198 = arith.negf %197 : vector<4x128xf32>
    %199 = math.exp %198 : vector<4x128xf32>
    %cst_79 = arith.constant 1.000000e+00 : f32
    %200 = vector.broadcast %cst_79 : f32 to vector<4x128xf32>
    %201 = arith.addf %200, %199 : vector<4x128xf32>
    %202 = arith.divf %200, %201 : vector<4x128xf32>
    %203 = vector.extract_strided_slice %29 {offsets = [0, 0, 0], sizes = [1, 32, 128], strides = [1, 1, 1]} : vector<4x32x128xf32> to vector<1x32x128xf32>
    %204 = vector.shape_cast %203 : vector<1x32x128xf32> to vector<32x128xf32>
    %205 = vector.extract_strided_slice %202 {offsets = [0, 0], sizes = [1, 128], strides = [1, 1]} : vector<4x128xf32> to vector<1x128xf32>
    %206 = vector.broadcast %205 : vector<1x128xf32> to vector<32x128xf32>
    %207 = arith.mulf %204, %206 : vector<32x128xf32>
    %c0_80 = arith.constant 0 : index
    %c0_81 = arith.constant 0 : index
    %c0_82 = arith.constant 0 : index
    %208 = vector.load %arg8[%c0_80, %c0_81, %c0_82] : memref<4x32x128xf32, #tpu.memory_space<vmem>>, vector<1x32x128xf32>
    %209 = vector.shape_cast %208 : vector<1x32x128xf32> to vector<32x128xf32>
    %210 = vector.shape_cast %207 : vector<32x128xf32> to vector<1x32x128xf32>
    tpu.vector_store %arg8[%c0_80, %c0_81, %c0_82], %210 {strides = array<i32>} : memref<4x32x128xf32, #tpu.memory_space<vmem>>, vector<1x32x128xf32>,
    %211 = vector.extract_strided_slice %29 {offsets = [1, 0, 0], sizes = [1, 32, 128], strides = [1, 1, 1]} : vector<4x32x128xf32> to vector<1x32x128xf32>
    %212 = vector.shape_cast %211 : vector<1x32x128xf32> to vector<32x128xf32>
    %213 = vector.extract_strided_slice %202 {offsets = [1, 0], sizes = [1, 128], strides = [1, 1]} : vector<4x128xf32> to vector<1x128xf32>
    %214 = vector.broadcast %213 : vector<1x128xf32> to vector<32x128xf32>
    %215 = arith.mulf %212, %214 : vector<32x128xf32>
    %c1_83 = arith.constant 1 : index
    %c0_84 = arith.constant 0 : index
    %c0_85 = arith.constant 0 : index
    %216 = vector.load %arg8[%c1_83, %c0_84, %c0_85] : memref<4x32x128xf32, #tpu.memory_space<vmem>>, vector<1x32x128xf32>
    %217 = vector.shape_cast %216 : vector<1x32x128xf32> to vector<32x128xf32>
    %218 = vector.shape_cast %215 : vector<32x128xf32> to vector<1x32x128xf32>
    tpu.vector_store %arg8[%c1_83, %c0_84, %c0_85], %218 {strides = array<i32>} : memref<4x32x128xf32, #tpu.memory_space<vmem>>, vector<1x32x128xf32>,
    %219 = vector.extract_strided_slice %29 {offsets = [2, 0, 0], sizes = [1, 32, 128], strides = [1, 1, 1]} : vector<4x32x128xf32> to vector<1x32x128xf32>
    %220 = vector.shape_cast %219 : vector<1x32x128xf32> to vector<32x128xf32>
    %221 = vector.extract_strided_slice %202 {offsets = [2, 0], sizes = [1, 128], strides = [1, 1]} : vector<4x128xf32> to vector<1x128xf32>
    %222 = vector.broadcast %221 : vector<1x128xf32> to vector<32x128xf32>
    %223 = arith.mulf %220, %222 : vector<32x128xf32>
    %c2_86 = arith.constant 2 : index
    %c0_87 = arith.constant 0 : index
    %c0_88 = arith.constant 0 : index
    %224 = vector.load %arg8[%c2_86, %c0_87, %c0_88] : memref<4x32x128xf32, #tpu.memory_space<vmem>>, vector<1x32x128xf32>
    %225 = vector.shape_cast %224 : vector<1x32x128xf32> to vector<32x128xf32>
    %226 = vector.shape_cast %223 : vector<32x128xf32> to vector<1x32x128xf32>
    tpu.vector_store %arg8[%c2_86, %c0_87, %c0_88], %226 {strides = array<i32>} : memref<4x32x128xf32, #tpu.memory_space<vmem>>, vector<1x32x128xf32>,
    %227 = vector.extract_strided_slice %29 {offsets = [3, 0, 0], sizes = [1, 32, 128], strides = [1, 1, 1]} : vector<4x32x128xf32> to vector<1x32x128xf32>
    %228 = vector.shape_cast %227 : vector<1x32x128xf32> to vector<32x128xf32>
    %229 = vector.extract_strided_slice %202 {offsets = [3, 0], sizes = [1, 128], strides = [1, 1]} : vector<4x128xf32> to vector<1x128xf32>
    %230 = vector.broadcast %229 : vector<1x128xf32> to vector<32x128xf32>
    %231 = arith.mulf %228, %230 : vector<32x128xf32>
    %c3_89 = arith.constant 3 : index
    %c0_90 = arith.constant 0 : index
    %c0_91 = arith.constant 0 : index
    %232 = vector.load %arg8[%c3_89, %c0_90, %c0_91] : memref<4x32x128xf32, #tpu.memory_space<vmem>>, vector<1x32x128xf32>
    %233 = vector.shape_cast %232 : vector<1x32x128xf32> to vector<32x128xf32>
    %234 = vector.shape_cast %231 : vector<32x128xf32> to vector<1x32x128xf32>
    tpu.vector_store %arg8[%c3_89, %c0_90, %c0_91], %234 {strides = array<i32>} : memref<4x32x128xf32, #tpu.memory_space<vmem>>, vector<1x32x128xf32>,
    return
  }
  func.func @transform_0(%arg0: i32) -> (i32, i32, i32) {
    %c0_i32 = arith.constant 0 : i32
    %c0_i32_0 = arith.constant 0 : i32
    %c0_i32_1 = arith.constant 0 : i32
    return %arg0, %c0_i32, %c0_i32_0 : i32, i32, i32
  }
  func.func @transform_1(%arg0: i32) -> (i32, i32) {
    %c0_i32 = arith.constant 0 : i32
    %c0_i32_0 = arith.constant 0 : i32
    %c0_i32_1 = arith.constant 0 : i32
    return %c0_i32, %c0_i32_0 : i32, i32
  }
  func.func @transform_2(%arg0: i32) -> (i32, i32) {
    %c0_i32 = arith.constant 0 : i32
    %c0_i32_0 = arith.constant 0 : i32
    %c0_i32_1 = arith.constant 0 : i32
    return %c0_i32, %c0_i32_0 : i32, i32
  }
  func.func @transform_3(%arg0: i32) -> (i32, i32) {
    %c0_i32 = arith.constant 0 : i32
    %c0_i32_0 = arith.constant 0 : i32
    %c0_i32_1 = arith.constant 0 : i32
    return %c0_i32, %c0_i32_0 : i32, i32
  }
  func.func @transform_4(%arg0: i32) -> (i32, i32) {
    %c0_i32 = arith.constant 0 : i32
    %c0_i32_0 = arith.constant 0 : i32
    %c0_i32_1 = arith.constant 0 : i32
    return %c0_i32, %c0_i32_0 : i32, i32
  }
  func.func @transform_5(%arg0: i32) -> (i32, i32) {
    %c0_i32 = arith.constant 0 : i32
    %c0_i32_0 = arith.constant 0 : i32
    %c0_i32_1 = arith.constant 0 : i32
    return %c0_i32, %c0_i32_0 : i32, i32
  }
  func.func @transform_6(%arg0: i32) -> i32 {
    %c0_i32 = arith.constant 0 : i32
    %c0_i32_0 = arith.constant 0 : i32
    return %c0_i32 : i32
  }
  func.func @transform_7(%arg0: i32) -> (i32, i32, i32) {
    %c0_i32 = arith.constant 0 : i32
    %c0_i32_0 = arith.constant 0 : i32
    %c0_i32_1 = arith.constant 0 : i32
    return %arg0, %c0_i32, %c0_i32_0 : i32, i32, i32
  }
}

</mosaic_0001>

<bundles_post_ra>
// kernel: tpu_custom_call.1
= control target key start
LH: loop header
LB: loop body
LE: loop exit
PB: predicated region body
PF: predicated region fallthrough
CT: control target
= control target key end

     0   :  { %s2641_s0 = inlined_call_operand.hbm [shape: f32[8,32,128], index: 0, kind: input, shape index: {}]   ;;  %s2642_s1 = inlined_call_operand.vmem [shape: f32[2,32], index: 1, kind: input, shape index: {}]   ;;  %s2643_s2 = inlined_call_operand.vmem [shape: f32[2,1], index: 2, kind: input, shape index: {}]   ;;  %s2644_s3 = inlined_call_operand.vmem [shape: f32[32,2], index: 3, kind: input, shape index: {}]   ;;  %s2645_s4 = inlined_call_operand.vmem [shape: f32[32,1], index: 4, kind: input, shape index: {}]   ;;  %s2646_s5 = inlined_call_operand.vmem [shape: f32[2,7], index: 5, kind: input, shape index: {}]   ;;  %s2647_s6 = inlined_call_operand.<no memory space> [shape: f32[1], index: 6, kind: input, shape index: {}]   ;;  %s2648_s7 = inlined_call_operand.hbm [shape: f32[8,32,128], index: 7, kind: output, shape index: {}]  }
   0x1   :  { %2653 = sst [smem:[#allocation12_spill]] %s2646_s5 }
   0x2   :  { %12 = sst [smem:[#allocation2]] %s2647_s6 }
   0x3   :  { %13 = vsyncpa [#allocation4], 0 }
   0x4   :  { %15 = vsyncpa [#allocation4 + $0x1], 0 }
   0x5   :  { %16 = vsyncpa [#allocation6], 0 }
   0x6   :  { %17 = vsyncpa [#allocation5], 0 }
   0x7   :  { %19 = vsyncpa [#allocation5 + $0x1], 0  ;;  %s2137_s26 = smov 0   ;;  %s2139_s27 = smov 0  }
   0x8   :  { %s2141_s28 = smov 0   ;;  %s2143_s29 = smov 0  }
   0x9 LB: > { %s2158_s6 = sadd.s32 4294967295, %s2076_s29   ;;  %s1621_s30 = sadd.s32 4294967294, %s2076_s29   ;;  %s2076_s29 = sphi %s2143_s29, %s2672_s29   ;;  %s2072_s28 = sphi %s2141_s28, %s2671_s28   ;;  %s2068_s27 = sphi %s2139_s27, %s2670_s27   ;;  %s2064_s26 = sphi %s2137_s26, %s2669_s26  }
   0xa   : > { %s2162_s8 = sadd.s32 1, %s2076_s29   ;;  %s32_s9 = sadd.s32 1, %s2072_s28 }
   0xb   : > { %s29_s10 = ssub.s32 %s2076_s29, %s2162_s8  ;;  %p39_p0 = scmp.ne.s32.totalorder %s2072_s28, %s2068_s27 }
   0xc   : > { %p30_p1 = scmp.eq.s32.totalorder %s29_s10, 0  ;;  %p40_p2 = scmp.eq.s32.totalorder %s2076_s29, 0 }
   0xd   : > { %p45_p3 = scmp.ne.s32.totalorder %s2068_s27, %s2064_s26  ;;  %p2650_p4 = scmp.eq.s32.totalorder %s2158_s6, 0 }
   0xe   : > { %s2174_s11 = scalar_select %p30_p1, %s2072_s28, %s32_s9  }
   0xf   : > { %p2176_p5 = por %p40_p2, %p39_p0  ;;  %p2182_p6 = por %p2650_p4, %p45_p3 }
  0x10   : > { %p195_p7 = scmp.eq.s32.totalorder %s2158_s6, 1  ;;  %p201_p8 = scmp.eq.s32.totalorder %s1621_s30, 1 }
  0x11   : > { %s2655_s13 = scalar_select %p2182_p6, 1, 0 }
  0x12   : > { %p1622_p9 = scmp.ge.s32.totalorder %s2076_s29, 1  ;;  %p208_p10 = scmp.lt.s32.totalorder %s2076_s29, 3 }
  0x13   : > { %p2189_p11 = por %p195_p7, %p39_p0  ;;  %p2193_p12 = por %p201_p8, %p45_p3 }
  0x14   : > { %p2197_p13 = pnand %p1622_p9, %p208_p10  ;;  %s2659_s5 = sld [smem:[#allocation12_spill]] }
  0x15   : > { %s2656_s14 = scalar_select %p2189_p11, 1, 0 }
  0x16   : > { %s2657_s15 = scalar_select %p2193_p12, 1, 0 }
  0x17   : > { %s2658_s16 = scalar_select %p2197_p13, 1, 0 }
  0x18   : > { %p1833_p1 = pneg %p2197_p13  ;;  %p1846_p2 = scmp.lt.s32.totalorder %s2076_s29, 2 }
  0x19   : > { %s247_s21 = sand.u32 1, %s2072_s28  }
  0x1a   : > { %s233_s19 = sshll.u32 %s2659_s5, 4  ;;  %p2210_p7 = pnand %p1833_p1, %p2650_p4  ;;  %s234_s19 = int_to_ptr.vmem [resolvable:$true] %s233_s19 }
  0x1b   : > { %p2217_p3 = pnand %p1846_p2, %p2176_p5  ;;  %s1625_s23 = sshll.u32 %s247_s21, 7 }
  0x1c   : > { %s1965_s24 = scalar_lea.vmem %s234_s19, 32  ;;  %p1967_p9 = pneg %p2210_p7 }
  0x1d   : > { %p1966_p8 = scmp.ne.s32.totalorder %s234_s19, %s1965_s24  ;;  %p1973_p12 = scmp.lt.s32.totalorder %s234_s19, %s234_s19 }
  0x1e   : > { %p1974_p11 = scmp.lt.s32.totalorder %s1965_s24, %s1965_s24 }
  0x1f   : > { %p1968_p10 = pnand %p1967_p9, %p1966_p8 }
  0x20   : > { %p1975_p1 = por %p1974_p11, %p1973_p12 }
  0x21   : > { %p1969_p0 = pneg %p1968_p10 }
  0x23   : > { %p1976_p4 = pnand %p1975_p1, %p1969_p0 }
  0x25   : > { %1979 = shalt.err (!%p1976_p4)
}
  0x26   : > { %s2078_s25 = smov [#allocation7]   ;;  %s1706_s30 = sshll.u32 %s2076_s29, 11 }
  0x27   : > { %1836 = dma.vmem_to_smem (!%p2210_p7), %s234_s19, 32, %s2078_s25, [#allocation6]  }
  0x28   : > { %s251_s9 = scalar_lea.vmem [#allocation3], %s1625_s23  ;;  %s2229_s18 = scalar_lea.hbm %s2641_s0, %s1706_s30 }
  0x29   : > { %s259_s10 = sshll.u32 %s251_s9, 4  ;;  %s2233_s24 = scalar_lea.sflag [#allocation4], %s247_s21  ;;  %s2231_s10 = int_to_ptr.vmem [resolvable:$true] %s259_s10 }
  0x2a   : > { %s1980_s5 = scalar_lea.hbm %s2229_s18, 2048  ;;  %p1982_p5 = pneg %p2217_p3 }
  0x2b   : > { %p1981_p4 = scmp.ne.s32.totalorder %s2229_s18, %s1980_s5  ;;  %s1985_s23 = scalar_lea.hbm %s2641_s0, 4096 }
  0x2c   : > { %p1986_p0 = scmp.lt.s32.totalorder %s2229_s18, %s2641_s0  ;;  %p1987_p2 = scmp.lt.s32.totalorder %s1985_s23, %s1980_s5 }
  0x2d   : > { %p1983_p11 = pnand %p1982_p5, %p1981_p4 }
  0x2e   : > { %p1988_p7 = por %p1987_p2, %p1986_p0 }
  0x2f   : > { %p1984_p12 = pneg %p1983_p11 }
  0x31   : > { %p1989_p8 = pnand %p1988_p7, %p1984_p12 }
  0x33   : > { %1992 = shalt.err (!%p1989_p8)
}
  0x34   : > { %s1993_s21 = scalar_lea.vmem %s2231_s10, 2048  ;;  %s2079_s9 = smov [#allocation3]  }
  0x35   : > { %p1994_p9 = scmp.ne.s32.totalorder %s2231_s10, %s1993_s21  ;;  %s1998_s12 = sshll.u32 %s2079_s9, 4  ;;  %s1999_s12 = int_to_ptr.vmem [resolvable:$false] %s1998_s12 }
  0x36   : > { %s2000_s17 = scalar_lea.vmem %s1999_s12, 4096  ;;  %p2001_p4 = scmp.lt.s32.totalorder %s2231_s10, %s1999_s12 }
  0x37   : > { %p1996_p10 = pnand %p1994_p9, %p1982_p5  ;;  %p2002_p11 = scmp.lt.s32.totalorder %s2000_s17, %s1993_s21 }
  0x39   : > { %p1997_p1 = pneg %p1996_p10  ;;  %p2003_p6 = por %p2002_p11, %p2001_p4 }
  0x3b   : > { %p2004_p13 = pnand %p2003_p6, %p1997_p1 }
  0x3d   : > { %2007 = shalt.err (!%p2004_p13)
}
  0x3e   : > { %s2080_s5 = smov 128   ;;  %s2081_s19 = smov 8  }
  0x3f   : > { %1840 = dma.hbm_to_vmem [thread:$0]  (!%p2217_p3), %s2229_s18, 2048, %s2231_s10, %s2233_s24, %s2080_s5, %s2080_s5, %s2081_s19  }
  0x40   : > { %p2662_p5 = scmp.ne.s32.totalorder %s2658_s16, 0 }
  0x41   : > { %s2257_s20 = sand.u32 (!%p2662_p5), 1, %s2068_s27   ;;  %p2663_p6 = scmp.ne.s32.totalorder (!%p2662_p5), %s2655_s13, 0 }
  0x42   : > { %271 = sbr.rel (%p2662_p5) target bundleno = 1043 (0x413), region = 48  ;;  %s1630_s23 = sshll.u32 (!%p2662_p5), %s2257_s20, 7 }
  0x43   : > { %s274_s25 = scalar_lea.sflag (!%p2662_p5), [#allocation4], %s2257_s20  ;;  %s2263_s30 = scalar_lea.vmem (!%p2662_p5), [#allocation3], %s1630_s23 }
  0x47   : > { %2051 = dma.done.wait (%p2663_p6), %s274_s25, 2048  }
  0x48   : > { %2053 = vsyncadd (%p2663_p6), %s274_s25, 4294965248  ;;  %p2664_p13 = scmp.eq.s32.totalorder %s2158_s6, 0 }
  0x4a   : > { %2055 = dma.done.wait (%p2664_p13), [#allocation6], 32   ;;  %p2665_p3 = pmov %p2664_p13 }
  0x4c   : > { %2057 = vsyncadd (%p2665_p3), [#allocation6], 4294967264 }
  0x4d   : > { %286 = sfence }
  0x4e   : > { %v2274_v0 = vld [vmem:[%s2263_s30 + $0x18] sm:$0xff]  ;;  %v2277_v1 = vld [vmem:[%s2263_s30 + $0x10] sm:$0xff]  ;;  %v2290_v4 = vld [vmem:[%s2263_s30 + $0x8] sm:$0xff]  ;;  %v2082_v8 = vmov 0.0   ;;  %vm2083_vm0 = vmmov 0   ;;  %vm382_vm1 = vcmask 261120  }
  0x4f   : > { %337 = vadd.xlane.f32.xlu0 %v2274_v0  ;;  %335 = vadd.xlane.f32.xlu1 %v2277_v1  ;;  %v2282_v2 = vld [vmem:[%s2263_s30 + $0x38] sm:$0xff]  ;;  %v2285_v3 = vld [vmem:[%s2263_s30 + $0x30] sm:$0xff]  ;;  %v2293_v5 = vld [vmem:[%s2263_s30 + $0x28] sm:$0xff]  ;;  %vm678_vm2 = vcmask 15360   ;;  %vm691_vm3 = vcmask 1041408   ;;  %s2511_s21 = sld [smem:[#allocation7 + $0x83]] }
  0x50   : > { %v2298_v6 = vld [vmem:[%s2263_s30] sm:$0xff]  ;;  %1749 = vmatprep.subr.mxu0 %v2082_v8  ;;  %1760 = vmatprep.subr.mxu1 %v2082_v8  ;;  %v2308_v9 = vld [vmem:[%s2263_s30 + $0x78] sm:$0xff]  ;;  %v2316_v11 = vld [vmem:[%s2263_s30 + $0x70] sm:$0xff]  ;;  %s2513_s9 = sld [smem:[#allocation7 + $0x3]]  ;;  %vm1321_vm4 = vcmask 1041409   ;;  %vm1323_vm5 = vcmask 1042434  }
  0x51   : > { %v2301_v7 = vld [vmem:[%s2263_s30 + $0x20] sm:$0xff]  ;;  %v2311_v10 = vld [vmem:[%s2263_s30 + $0x58] sm:$0xff]  ;;  %v2319_v12 = vld [vmem:[%s2263_s30 + $0x50] sm:$0xff]  ;;  %1757 = vmatprep.mubr.msk.f32.mxu0 %vm2083_vm0, %v2082_v8  ;;  %1768 = vmatprep.mubr.msk.f32.mxu1 %vm2083_vm0, %v2082_v8  ;;  %vm1325_vm6 = vcmask 1043459   ;;  %s2085_s12 = smov 3   ;;  %s2086_s17 = smov 2  }
  0x52   : > { %v2324_v13 = vld [vmem:[%s2263_s30 + $0x68] sm:$0xff]  ;;  %v2332_v15 = vld [vmem:[%s2263_s30 + $0x60] sm:$0xff]  ;;  %v672_v61 = vld [vmem:[%s2644_s3 + $0x10] sm:$0xff]  ;;  %s2087_s5 = smov 1   ;;  %s2088_s19 = smov 127  }
  0x53   : > { %345 = vadd.xlane.f32.xlu0 %v2282_v2  ;;  %343 = vadd.xlane.f32.xlu1 %v2285_v3  ;;  %v2327_v14 = vld [vmem:[%s2263_s30 + $0x48] sm:$0xff]  ;;  %v2335_v16 = vld [vmem:[%s2263_s30 + $0x40] sm:$0xff]  ;;  %v673_v62 = vld [vmem:[%s2644_s3 + $0x18] sm:$0xff]  ;;  %s2089_s25 = smov 126   ;;  %s2090_s30 = smov 125  }
  0x54   : > { %v380_v33 = vld [vmem:[%s2642_s1] sm:$0x3]  ;;  %v671_v60 = vld [vmem:[%s2644_s3 + $0x8] sm:$0xff]  ;;  %s1673_s13 = sld [smem:[#allocation7 + $0x80]]  ;;  %p2666_p0 = scmp.ne.s32.totalorder %s2656_s14, 0 }
  0x55   : > { %v670_v50 = vld [vmem:[%s2644_s3] sm:$0xff]  ;;  %s1344_s16 = sld [smem:[#allocation7]] }
  0x56   : > { %v381_v51 = vld [vmem:[%s2643_s2] sm:$0x3]  ;;  %s1675_s22 = sld [smem:[#allocation7 + $0x81]] }
  0x57   : > { %333 = vadd.xlane.f32.xlu0 %v2290_v4  ;;  %341 = vadd.xlane.f32.xlu1 %v2293_v5  ;;  %s1674_s10 = sld [smem:[#allocation7 + $0x1]] }
  0x58   : > { %s2526_s18 = sld [smem:[#allocation7 + $0x82]] }
  0x59   : > { %s1676_s24 = sld [smem:[#allocation7 + $0x2]] }
  0x5b   : > { %331 = vadd.xlane.f32.xlu0 %v2298_v6  ;;  %339 = vadd.xlane.f32.xlu1 %v2301_v7 }
  0x5f   : > { %361 = vadd.xlane.f32.xlu1 %v2308_v9  ;;  %353 = vadd.xlane.f32.xlu0 %v2311_v10 }
  0x63   : > { %359 = vadd.xlane.f32.xlu1 %v2316_v11  ;;  %351 = vadd.xlane.f32.xlu0 %v2319_v12 }
  0x67   : > { %357 = vadd.xlane.f32.xlu1 %v2324_v13  ;;  %349 = vadd.xlane.f32.xlu0 %v2327_v14 }
  0x6b   : > { %355 = vadd.xlane.f32.xlu1 %v2332_v15  ;;  %347 = vadd.xlane.f32.xlu0 %v2335_v16 }
  0xd8   : > { %v338_v17 = vpop.xlane.xlu0 %337  ;;  %v336_v18 = vpop.xlane.xlu1 %335 }
  0xd9   : > { %v367_v19 = vmul.f32 0.0078125, %v338_v17  ;;  %v366_v20 = vmul.f32 0.0078125, %v336_v18 }
  0xdb   : > { %1750 = vmatpush3.msra.mxu0 %v367_v19 }
  0xdc   : > { %v346_v21 = vpop.xlane.xlu0 %345  ;;  %1751 = vmatprep.subr.mxu0 %v2082_v8  ;;  %v344_v22 = vpop.xlane.xlu1 %343 }
  0xdd   : > { %v371_v23 = vmul.f32 0.0078125, %v346_v21  ;;  %v370_v24 = vmul.f32 0.0078125, %v344_v22  ;;  %1752 = vmatpush3.msra.mxu0 %v366_v20 }
  0xde   : > { %1753 = vmatprep.subr.mxu0 %v2082_v8 }
  0xdf   : > { %1761 = vmatpush3.msra.mxu1 %v371_v23  ;;  %v2084_v23 = vmov 0  }
  0xe0   : > { %v334_v25 = vpop.xlane.xlu0 %333  ;;  %1762 = vmatprep.subr.mxu1 %v2082_v8  ;;  %v342_v26 = vpop.xlane.xlu1 %341  ;;  %1895 = vset.pattern.permute.xlu1 %v2084_v23 }
  0xe1   : > { %v365_v27 = vmul.f32 0.0078125, %v334_v25  ;;  %v369_v28 = vmul.f32 0.0078125, %v342_v26  ;;  %1763 = vmatpush3.msra.mxu1 %v370_v24  ;;  %1896 = vset.pattern.permute.xlu0 %v2084_v23  ;;  %v675_v24 = vld [vmem:[%s2645_s4 + $0x8] sm:$0xff]  ;;  %v2413_v26 = vld [vmem:[%s2645_s4] sm:$0xff] }
  0xe2   : > { %1764 = vmatprep.subr.mxu1 %v2082_v8 }
  0xe3   : > { %1754 = vmatpush3.msra.mxu0 %v365_v27  ;;  %1765 = vmatpush3.msra.mxu1 %v369_v28 }
  0xe4   : > { %v332_v29 = vpop.xlane.xlu0 %331  ;;  %v340_v30 = vpop.xlane.xlu1 %339  ;;  %1755 = vmatprep.subr.mxu0 %v2082_v8  ;;  %1766 = vmatprep.subr.mxu1 %v2082_v8 }
  0xe5   : > { %v364_v31 = vmul.f32 0.0078125, %v332_v29  ;;  %v368_v32 = vmul.f32 0.0078125, %v340_v30 }
  0xe7   : > { %1756 = vmatpush3.msra.mxu0 %v364_v31  ;;  %1767 = vmatpush3.msra.mxu1 %v368_v32  ;;  %v2418_v32 = vld [vmem:[%s2645_s4 + $0x18] sm:$0xff] }
  0xe8   : > { %1758 = vmatmul.mubr.msk.f32.vlgmr.msra.gmra.mxu0 %vm382_vm1, %v380_v33  ;;  %1769 = vmatmul.mubr.msk.f32.vlgmr.msra.gmra.mxu1 %vm382_vm1, %v380_v33  ;;  %v362_v34 = vpop.xlane.xlu1 %361  ;;  %v354_v35 = vpop.xlane.xlu0 %353 }
  0xe9   : > { %v379_v36 = vmul.f32 0.0078125, %v362_v34  ;;  %v375_v37 = vmul.f32 0.0078125, %v354_v35  ;;  %1771 = vmatprep.subr.mxu0 %v2082_v8  ;;  %1782 = vmatprep.subr.mxu1 %v2082_v8 }
  0xea   : > { %1779 = vmatprep.mubr.msk.f32.mxu0 %vm2083_vm0, %v2082_v8  ;;  %1790 = vmatprep.mubr.msk.f32.mxu1 %vm2083_vm0, %v2082_v8 }
  0xeb   : > { %1772 = vmatpush3.msra.mxu0 %v375_v37  ;;  %1783 = vmatpush3.msra.mxu1 %v379_v36 }
  0xec   : > { %v360_v38 = vpop.xlane.xlu1 %359  ;;  %v352_v39 = vpop.xlane.xlu0 %351  ;;  %1773 = vmatprep.subr.mxu0 %v2082_v8  ;;  %1784 = vmatprep.subr.mxu1 %v2082_v8 }
  0xed   : > { %v378_v40 = vmul.f32 0.0078125, %v360_v38  ;;  %v374_v41 = vmul.f32 0.0078125, %v352_v39 }
  0xef   : > { %1774 = vmatpush3.msra.mxu0 %v374_v41  ;;  %1785 = vmatpush3.msra.mxu1 %v378_v40 }
  0xf0   : > { %v358_v42 = vpop.xlane.xlu1 %357  ;;  %v350_v43 = vpop.xlane.xlu0 %349  ;;  %1786 = vmatprep.subr.mxu1 %v2082_v8  ;;  %1775 = vmatprep.subr.mxu0 %v2082_v8 }
  0xf1   : > { %v377_v44 = vmul.f32 0.0078125, %v358_v42  ;;  %v373_v45 = vmul.f32 0.0078125, %v350_v43 }
  0xf3   : > { %1776 = vmatpush3.msra.mxu0 %v373_v45  ;;  %1787 = vmatpush3.msra.mxu1 %v377_v44 }
  0xf4   : > { %v356_v46 = vpop.xlane.xlu1 %355  ;;  %v348_v47 = vpop.xlane.xlu0 %347  ;;  %1777 = vmatprep.subr.mxu0 %v2082_v8  ;;  %1788 = vmatprep.subr.mxu1 %v2082_v8 }
  0xf5   : > { %v376_v48 = vmul.f32 0.0078125, %v356_v46  ;;  %v372_v49 = vmul.f32 0.0078125, %v348_v47  ;;  %v676_v46 = vld [vmem:[%s2645_s4 + $0x10] sm:$0xff] }
  0xf7   : > { %1778 = vmatpush3.msra.mxu0 %v372_v49  ;;  %1789 = vmatpush3.msra.mxu1 %v376_v48 }
  0xf8   : > { %1780 = vmatmul.mubr.msk.f32.vlgmr.msra.gmra.mxu0 %vm382_vm1, %v380_v33  ;;  %1791 = vmatmul.mubr.msk.f32.vlgmr.msra.gmra.mxu1 %vm382_vm1, %v380_v33 }
  0xf9   : > { %1795 = vmatprep.mubr.msk.f32.mxu0 %vm678_vm2, %v670_v50  ;;  %1803 = vmatprep.mubr.msk.f32.mxu1 %vm678_vm2, %v670_v50 }
 0x1a8   : > { %v452_v52 = vpop.f32.mrf.mxu0  ;;  %v522_v53 = vpop.f32.mrf.mxu1 }
 0x1a9   : > { %v453_v54 = vadd.f32 %v452_v52, %v381_v51  ;;  %v523_v55 = vadd.f32 %v522_v53, %v381_v51 }
 0x1aa   : > { %v1759_v56 = vpop.f32.mrf.mxu0  ;;  %v1770_v57 = vpop.f32.mrf.mxu1 }
 0x1ab   : > { %v666_v58 = vmax.f32 %v453_v54, 0.0  ;;  %v667_v59 = vmax.f32 %v523_v55, 0.0 }
 0x1ad   : > { %1793 = vmatprep.subr.msk.mxu0 %vm691_vm3, %v666_v58  ;;  %1801 = vmatprep.subr.msk.mxu1 %vm691_vm3, %v667_v59 }
 0x1ae   : > { %1794 = vmatpush3.msk.msra.mxu0 %vm691_vm3, %v666_v58  ;;  %1802 = vmatpush3.msk.msra.mxu1 %vm691_vm3, %v667_v59 }
 0x1af   : > { %1796 = vmatmul.mubr.msk.f32.vlgmr.msra.gmra.mxu0 %vm678_vm2, %v671_v60  ;;  %1804 = vmatmul.mubr.msk.f32.vlgmr.msra.gmra.mxu1 %vm678_vm2, %v671_v60 }
 0x1b0   : > { %1806 = vmatprep.mubr.msk.f32.mxu1 %vm678_vm2, %v672_v61  ;;  %1798 = vmatprep.mubr.msk.f32.mxu0 %vm678_vm2, %v672_v61 }
 0x1b3   : > { %1807 = vmatmul.mubr.msk.f32.gmra.mxu1 %vm678_vm2, %v673_v62  ;;  %1799 = vmatmul.mubr.msk.f32.gmra.mxu0 %vm678_vm2, %v673_v62 }
 0x1b4   : > { %1819 = vmatprep.mubr.msk.f32.mxu1 %vm678_vm2, %v670_v50  ;;  %1811 = vmatprep.mubr.msk.f32.mxu0 %vm678_vm2, %v670_v50 }
 0x1b8   : > { %v592_v63 = vpop.f32.mrf.mxu0  ;;  %v662_v8 = vpop.f32.mrf.mxu1 }
 0x1b9   : > { %v593_v17 = vadd.f32 %v592_v63, %v381_v51  ;;  %v663_v18 = vadd.f32 %v662_v8, %v381_v51 }
 0x1ba   : > { %v1781_v19 = vpop.f32.mrf.mxu0  ;;  %v1792_v20 = vpop.f32.mrf.mxu1 }
 0x1bb   : > { %v668_v21 = vmax.f32 %v593_v17, 0.0  ;;  %v669_v22 = vmax.f32 %v663_v18, 0.0 }
 0x1bd   : > { %1817 = vmatprep.subr.msk.mxu1 %vm691_vm3, %v669_v22  ;;  %1809 = vmatprep.subr.msk.mxu0 %vm691_vm3, %v668_v21 }
 0x1be   : > { %1818 = vmatpush3.msk.msra.mxu1 %vm691_vm3, %v669_v22  ;;  %1810 = vmatpush3.msk.msra.mxu0 %vm691_vm3, %v668_v21 }
 0x1bf   : > { %1820 = vmatmul.mubr.msk.f32.vlgmr.msra.gmra.mxu1 %vm678_vm2, %v671_v60  ;;  %1812 = vmatmul.mubr.msk.f32.vlgmr.msra.gmra.mxu0 %vm678_vm2, %v671_v60 }
 0x1c0   : > { %1822 = vmatprep.mubr.msk.f32.mxu1 %vm678_vm2, %v672_v61  ;;  %1814 = vmatprep.mubr.msk.f32.mxu0 %vm678_vm2, %v672_v61 }
 0x1c3   : > { %1823 = vmatmul.mubr.msk.f32.gmra.mxu1 %vm678_vm2, %v673_v62  ;;  %1815 = vmatmul.mubr.msk.f32.gmra.mxu0 %vm678_vm2, %v673_v62 }
 0x26f   : > { %v1797_v25 = vpop.f32.mrf.mxu0  ;;  %v1805_v27 = vpop.f32.mrf.mxu1 }
 0x270   : > { %v767_v28 = vadd.f32 %v1797_v25, %v675_v24  ;;  %v855_v29 = vadd.f32 %v1805_v27, %v675_v24 }
 0x271   : > { %v761_v30 = vpop.f32.mrf.mxu0  ;;  %v849_v31 = vpop.f32.mrf.mxu1 }
 0x272   : > { %v1658_v33 = vmul.f32 -1.442695, %v767_v28  ;;  %v762_v34 = vadd.f32 %v761_v30, %v2413_v26  ;;  %v1662_v35 = vmul.f32 -1.442695, %v855_v29  ;;  %v850_v36 = vadd.f32 %v849_v31, %v2413_v26 }
 0x273   : > { %v1808_v37 = vpop.f32.mrf.mxu1  ;;  %v1800_v38 = vpop.f32.mrf.mxu0 }
 0x274   : > { %1897 = vpow2.f32 %v1658_v33  ;;  %v1657_v39 = vmul.f32 -1.442695, %v762_v34  ;;  %v1661_v40 = vmul.f32 -1.442695, %v850_v36  ;;  %v865_v41 = vadd.f32 %v1808_v37, %v2418_v32 }
 0x275   : > { %1899 = vpow2.f32 %v1662_v35  ;;  %v777_v42 = vadd.f32 %v1800_v38, %v2418_v32  ;;  %v771_v43 = vpop.f32.mrf.mxu0  ;;  %v859_v47 = vpop.f32.mrf.mxu1 }
 0x276   : > { %1901 = vpow2.f32 %v1657_v39  ;;  %v1664_v44 = vmul.f32 -1.442695, %v865_v41  ;;  %v772_v48 = vadd.f32 %v771_v43, %v676_v46  ;;  %v860_v49 = vadd.f32 %v859_v47, %v676_v46 }
 0x277   : > { %1903 = vpow2.f32 %v1661_v40  ;;  %v1660_v45 = vmul.f32 -1.442695, %v777_v42 }
 0x278   : > { %1905 = vpow2.f32 %v1664_v44  ;;  %v1659_v50 = vmul.f32 -1.442695, %v772_v48  ;;  %v1663_v51 = vmul.f32 -1.442695, %v860_v49 }
 0x279   : > { %1907 = vpow2.f32 %v1660_v45 }
 0x27a   : > { %1909 = vpow2.f32 %v1659_v50 }
 0x27b   : > { %1911 = vpow2.f32 %v1663_v51 }
 0x27f   : > { %v1821_v52 = vpop.f32.mrf.mxu1  ;;  %v1813_v57 = vpop.f32.mrf.mxu0 }
 0x280   : > { %v1031_v63 = vadd.f32 %v1821_v52, %v675_v24  ;;  %v943_v23 = vadd.f32 %v1813_v57, %v675_v24 }
 0x281   : > { %v1898_v53 = vpop.eup %1897  ;;  %v1025_v54 = vpop.f32.mrf.mxu1 }
 0x282   : > { %v1900_v55 = vpop.eup %1899  ;;  %v1093_v56 = vadd.f32 1.0, %v1898_v53  ;;  %v937_v20 = vpop.f32.mrf.mxu0  ;;  %v1670_v25 = vmul.f32 -1.442695, %v1031_v63  ;;  %v1026_v33 = vadd.f32 %v1025_v54, %v2413_v26  ;;  %v1666_v34 = vmul.f32 -1.442695, %v943_v23 }
 0x283   : > { %v1902_v58 = vpop.eup %1901  ;;  %v1097_v59 = vadd.f32 1.0, %v1900_v55  ;;  %v1824_v60 = vpop.f32.mrf.mxu1  ;;  %v938_v30 = vadd.f32 %v937_v20, %v2413_v26 }
 0x284   : > { %v1904_v61 = vpop.eup %1903  ;;  %1913 = vrcp.f32 %v1093_v56  ;;  %v1092_v62 = vadd.f32 1.0, %v1902_v58  ;;  %v1041_v19 = vadd.f32 %v1824_v60, %v2418_v32  ;;  %v1816_v28 = vpop.f32.mrf.mxu0  ;;  %v1669_v24 = vmul.f32 -1.442695, %v1026_v33 }
 0x285   : > { %v1906_v8 = vpop.eup %1905  ;;  %1915 = vrcp.f32 %v1097_v59  ;;  %v1035_v17 = vpop.f32.mrf.mxu1  ;;  %v1096_v21 = vadd.f32 1.0, %v1904_v61  ;;  %v1665_v38 = vmul.f32 -1.442695, %v938_v30  ;;  %v953_v26 = vadd.f32 %v1816_v28, %v2418_v32 }
 0x286   : > { %v1908_v18 = vpop.eup %1907  ;;  %1917 = vrcp.f32 %v1092_v62  ;;  %v1036_v27 = vadd.f32 %v1035_v17, %v676_v46  ;;  %v1099_v29 = vadd.f32 1.0, %v1906_v8  ;;  %v1672_v31 = vmul.f32 -1.442695, %v1041_v19  ;;  %v947_v36 = vpop.f32.mrf.mxu0 }
 0x287   : > { %v1095_v22 = vadd.f32 1.0, %v1908_v18  ;;  %v1910_v37 = vpop.eup %1909  ;;  %v948_v39 = vadd.f32 %v947_v36, %v676_v46  ;;  %v1668_v49 = vmul.f32 -1.442695, %v953_v26 }
 0x288   : > { %v1671_v35 = vmul.f32 -1.442695, %v1036_v27  ;;  %v1912_v40 = vpop.eup %1911  ;;  %v1094_v41 = vadd.f32 1.0, %v1910_v37 }
 0x289   : > { %1919 = vrcp.f32 %v1095_v22  ;;  %v1667_v45 = vmul.f32 -1.442695, %v948_v39  ;;  %v1098_v47 = vadd.f32 1.0, %v1912_v40 }
 0x28a   : > { %1921 = vrcp.f32 %v1096_v21 }
 0x28b   : > { %1923 = vpow2.f32 %v1670_v25 }
 0x28c   : > { %1925 = vrcp.f32 %v1099_v29 }
 0x28d   : > { %1927 = vpow2.f32 %v1672_v31 }
 0x28e   : > { %1929 = vpow2.f32 %v1666_v34 }
 0x28f   : > { %1931 = vpow2.f32 %v1671_v35 }
 0x290   : > { %1933 = vpow2.f32 %v1665_v38 }
 0x291   : > { %v1914_v42 = vpop.eup %1913  ;;  %1935 = vpow2.f32 %v1669_v24 }
 0x292   : > { %v1916_v43 = vpop.eup %1915  ;;  %1147 = vperm.xlu1 %1895, %v1914_v42   ;;  %1937 = vrcp.f32 %v1094_v41 }
 0x293   : > { %v1918_v44 = vpop.eup %1917  ;;  %1939 = vpow2.f32 %v1667_v45 }
 0x294   : > { %1142 = vperm.xlu0 %1896, %v1918_v44   ;;  %1941 = vrcp.f32 %v1098_v47 }
 0x295   : > { %1943 = vpow2.f32 %v1668_v49 }
 0x296   : > { %v1920_v48 = vpop.eup %1919  ;;  %1167 = vperm.xlu1 %1895, %v1916_v43  }
 0x297   : > { %v1922_v46 = vpop.eup %1921 }
 0x298   : > { %1157 = vperm.xlu0 %1896, %v1920_v48   ;;  %v1924_v50 = vpop.eup %1923 }
 0x299   : > { %v1926_v51 = vpop.eup %1925  ;;  %v1105_v52 = vadd.f32 1.0, %v1924_v50 }
 0x29a   : > { %1162 = vperm.xlu1 %1895, %v1922_v46   ;;  %v1928_v53 = vpop.eup %1927 }
 0x29b   : > { %v1930_v54 = vpop.eup %1929  ;;  %1945 = vrcp.f32 %v1105_v52  ;;  %v1107_v57 = vadd.f32 1.0, %v1928_v53 }
 0x29c   : > { %v1932_v32 = vpop.eup %1931  ;;  %v1101_v55 = vadd.f32 1.0, %v1930_v54 }
 0x29d   : > { %v1934_v56 = vpop.eup %1933  ;;  %v1106_v58 = vadd.f32 1.0, %v1932_v32 }
 0x29e   : > { %1177 = vperm.xlu1 %1895, %v1926_v51   ;;  %1947 = vrcp.f32 %v1101_v55  ;;  %v1100_v59 = vadd.f32 1.0, %v1934_v56  ;;  %v1936_v60 = vpop.eup %1935 }
 0x29f   : > { %1949 = vrcp.f32 %v1106_v58  ;;  %v1938_v61 = vpop.eup %1937  ;;  %v1104_v62 = vadd.f32 1.0, %v1936_v60 }
 0x2a0   : > { %1951 = vrcp.f32 %v1107_v57  ;;  %v1940_v63 = vpop.eup %1939 }
 0x2a1   : > { %1953 = vrcp.f32 %v1100_v59  ;;  %v1942_v8 = vpop.eup %1941  ;;  %v1102_v17 = vadd.f32 1.0, %v1940_v63 }
 0x2a2   : > { %1152 = vperm.xlu1 %1895, %v1938_v61   ;;  %1955 = vrcp.f32 %v1104_v62  ;;  %v1944_v18 = vpop.eup %1943 }
 0x2a3   : > { %v1103_v20 = vadd.f32 1.0, %v1944_v18  ;;  %1957 = vrcp.f32 %v1102_v17 }
 0x2a5   : > { %1959 = vrcp.f32 %v1103_v20 }
 0x2a6   : > { %1172 = vperm.xlu1 %1895, %v1942_v8  }
 0x2a8   : > { %v1946_v19 = vpop.eup %1945 }
 0x2a9   : > { %1207 = vperm.xlu0 %1896, %v1946_v19  }
 0x2ab   : > { %v1948_v21 = vpop.eup %1947 }
 0x2ac   : > { %v1950_v22 = vpop.eup %1949  ;;  %1187 = vperm.xlu1 %1895, %v1948_v21  }
 0x2ad   : > { %1212 = vperm.xlu0 %1896, %v1950_v22   ;;  %v1952_v23 = vpop.eup %1951 }
 0x2ae   : > { %v1954_v25 = vpop.eup %1953 }
 0x2af   : > { %v1956_v27 = vpop.eup %1955 }
 0x2b0   : > { %1182 = vperm.xlu1 %1895, %v1954_v25   ;;  %v1958_v28 = vpop.eup %1957 }
 0x2b1   : > { %1217 = vperm.xlu0 %1896, %v1952_v23  }
 0x2b2   : > { %v1960_v29 = vpop.eup %1959 }
 0x2b4   : > { %1202 = vperm.xlu1 %1895, %v1956_v27  }
 0x2b8   : > { %1192 = vperm.xlu1 %1895, %v1958_v28  }
 0x2bc   : > { %1197 = vperm.xlu1 %1895, %v1960_v29  }
 0x30d   : > { %v1148_v30 = vpop.permute.xlu1 %1147 }
 0x30e   : > { %v2444_v42 = vmul.f32 %v1148_v30, %v2290_v4 }
 0x30f   : > { %v1143_v35 = vpop.permute.xlu0 %1142 }
 0x310   : > { %v2435_v39 = vmul.f32 %v1143_v35, %v2298_v6 }
 0x311   : > { %v1168_v31 = vpop.permute.xlu1 %1167 }
 0x312   : > { %v2438_v40 = vmul.f32 %v1168_v31, %v2293_v5  ;;  %v1236_v44 = vadd.f32 %v2444_v42, %v2435_v39 }
 0x313   : > { %v1158_v38 = vpop.permute.xlu0 %1157 }
 0x314   : > { %v2465_v49 = vmul.f32 %v1158_v38, %v2274_v0 }
 0x315   : > { %v1163_v33 = vpop.permute.xlu1 %1162 }
 0x316   : > { %v2432_v37 = vmul.f32 %v1163_v33, %v2301_v7 }
 0x318   : > { %v1245_v43 = vadd.f32 %v2438_v40, %v2432_v37  ;;  %v1286_v6 = vmax.f32 %v2432_v37, %v2438_v40 }
 0x319   : > { %v1178_v34 = vpop.permute.xlu1 %1177 }
 0x31a   : > { %v2459_v4 = vmul.f32 %v1178_v34, %v2282_v2 }
 0x31d   : > { %v1153_v36 = vpop.permute.xlu1 %1152 }
 0x31e   : > { %v2449_v7 = vmul.f32 %v1153_v36, %v2277_v1 }
 0x320   : > { %v1237_v45 = vadd.f32 %v1236_v44, %v2449_v7 }
 0x321   : > { %v1173_v24 = vpop.permute.xlu1 %1172 }
 0x322   : > { %v2441_v41 = vmul.f32 %v1173_v24, %v2285_v3  ;;  %v1277_v3 = vmax.f32 %v2435_v39, %v2444_v42  ;;  %v1238_v50 = vadd.f32 %v1237_v45, %v2465_v49 }
 0x324   : > { %v1246_v5 = vadd.f32 %v1245_v43, %v2441_v41  ;;  %v1208_v26 = vpop.permute.xlu0 %1207  ;;  %v1287_v1 = vmax.f32 %v1286_v6, %v2441_v41  ;;  %v1278_v48 = vmax.f32 %v1277_v3, %v2449_v7  ;;  %v1239_v32 = vrot.slane %v1238_v50, 4 }
 0x325   : > { %v2472_v57 = vmul.f32 %v1208_v26, %v2324_v13 }
 0x326   : > { %v1247_v46 = vadd.f32 %v1246_v5, %v2459_v4  ;;  %v1288_v51 = vmax.f32 %v1287_v1, %v2459_v4  ;;  %v1279_v2 = vmax.f32 %v1278_v48, %v2465_v49  ;;  %v1240_v13 = vadd.f32 %v1239_v32, %v1238_v50 }
 0x327   : > { %v1188_v47 = vpop.permute.xlu1 %1187 }
 0x328   : > { %v1213_v52 = vpop.permute.xlu0 %1212  ;;  %v1248_v54 = vrot.slane %v1247_v46, 4  ;;  %v1289_v55 = vrot.slane %v1288_v51, 4  ;;  %v1280_v58 = vrot.slane %v1279_v2, 4  ;;  %v1241_v27 = vrot.slane %v1240_v13, 2 }
 0x329   : > { %v2481_v62 = vmul.f32 %v1213_v52, %v2316_v11 }
 0x32a   : > { %v1249_v59 = vadd.f32 %v1248_v54, %v1247_v46  ;;  %v1290_v17 = vmax.f32 %v1288_v51, %v1289_v55  ;;  %v1281_v21 = vmax.f32 %v1279_v2, %v1280_v58  ;;  %v1242_v6 = vadd.f32 %v1241_v27, %v1240_v13 }
 0x32b   : > { %v1183_v53 = vpop.permute.xlu1 %1182 }
 0x32c   : > { %v2478_v60 = vmul.f32 %v1183_v53, %v2335_v16  ;;  %v1218_v61 = vpop.permute.xlu0 %1217  ;;  %v1250_v22 = vrot.slane %v1249_v59, 2  ;;  %v1291_v28 = vrot.slane %v1290_v17, 2  ;;  %v1282_v35 = vrot.slane %v1281_v21, 2 }
 0x32d   : > { %v2491_v19 = vmul.f32 %v1218_v61, %v2308_v9  ;;  %v1243_v51 = vrot.slane %v1242_v6, 1 }
 0x32e   : > { %v1251_v36 = vadd.f32 %v1250_v22, %v1249_v59  ;;  %v1292_v5 = vmax.f32 %v1290_v17, %v1291_v28  ;;  %v1400_v28 = vstv %s2511_s21  ;;  %s2528_s21 = sld [smem:[#allocation2]] }
 0x32f   : > { %v1203_v56 = vpop.permute.xlu1 %1202  ;;  %v1244_v61 = vadd.f32 %v1243_v51, %v1242_v6  ;;  %v1348_v6 = vstv %s1673_s13  ;;  %s2558_s13 = scalar_lea.vmem [#allocation8], %s1630_s23 }
 0x330   : > { %v2475_v0 = vmul.f32 %v1203_v56, %v2332_v15  ;;  %v2488_v15 = vmul.f32 %v1188_v47, %v2327_v14  ;;  %v1283_v47 = vmax.f32 %v1281_v21, %v1282_v35  ;;  %v1252_v48 = vrot.slane %v1251_v36, 1 }
 0x331   : > { %v1293_v52 = vrot.slane %v1292_v5, 1 }
 0x332   : > { %v1263_v63 = vadd.f32 %v2472_v57, %v2475_v0  ;;  %v1304_v8 = vmax.f32 %v2475_v0, %v2472_v57  ;;  %v1254_v23 = vadd.f32 %v2488_v15, %v2478_v60  ;;  %v1295_v14 = vmax.f32 %v2478_v60, %v2488_v15 }
 0x333   : > { %v1193_v18 = vpop.permute.xlu1 %1192  ;;  %v1284_v32 = vrot.slane %v1283_v47, 1  ;;  %v1253_v55 = vadd.f32 %v1252_v48, %v1251_v36  ;;  %v1367_v48 = vstv %s1675_s22 }
 0x334   : > { %v1264_v16 = vadd.f32 %v1263_v63, %v2481_v62  ;;  %v1305_v11 = vmax.f32 %v1304_v8, %v2481_v62  ;;  %v2496_v20 = vmul.f32 %v1193_v18, %v2319_v12  ;;  %v1294_v63 = vmax.f32 %v1292_v5, %v1293_v52 }
 0x335   : > { %v1285_v18 = vmax.f32 %v1283_v47, %v1284_v32 }
 0x336   : > { %v1265_v25 = vadd.f32 %v1264_v16, %v2491_v19  ;;  %v1306_v9 = vmax.f32 %v1305_v11, %v2491_v19  ;;  %v1255_v29 = vadd.f32 %v1254_v23, %v2496_v20  ;;  %v1296_v33 = vmax.f32 %v1295_v14, %v2496_v20 }
 0x337   : > { %v1198_v30 = vpop.permute.xlu1 %1197  ;;  %v1274_v16 = vmul.f32 0.03125, %v1253_v55  ;;  %v1273_v23 = vmul.f32 0.03125, %v1244_v61 }
 0x338   : > { %v1266_v31 = vrot.slane %v1265_v25, 4  ;;  %v1307_v12 = vrot.slane %v1306_v9, 4  ;;  %v2507_v34 = vmul.f32 %v1198_v30, %v2311_v10 }
 0x33a   : > { %v1267_v38 = vadd.f32 %v1266_v31, %v1265_v25  ;;  %v1308_v24 = vmax.f32 %v1306_v9, %v1307_v12  ;;  %v1256_v43 = vadd.f32 %v1255_v29, %v2507_v34  ;;  %v1297_v44 = vmax.f32 %v1296_v33, %v2507_v34 }
 0x33b   : > { %v1334_v25 = vsel %vm1321_vm4, %v1294_v63, %v1285_v18  ;;  %v1322_v31 = vsel %vm1321_vm4, %v1274_v16, %v1273_v23  ;;  %v1397_v12 = vstv %s2513_s9  ;;  %s2531_s9 = sld [smem:[#allocation7 + $0x84]] }
 0x33c   : > { %v1268_v26 = vrot.slane %v1267_v38, 2  ;;  %v1309_v3 = vrot.slane %v1308_v24, 2  ;;  %v1257_v45 = vrot.slane %v1256_v43, 4  ;;  %v1298_v1 = vrot.slane %v1297_v44, 4 }
 0x33e   : > { %v1269_v46 = vadd.f32 %v1268_v26, %v1267_v38  ;;  %v1258_v50 = vadd.f32 %v1257_v45, %v1256_v43  ;;  %v1299_v10 = vmax.f32 %v1297_v44, %v1298_v1  ;;  %v1310_v53 = vmax.f32 %v1308_v24, %v1309_v3 }
 0x33f   : > { %v1313_v43 = vlaneseq  ;;  %v1345_v26 = vstv %s1344_s16  ;;  %s1536_s16 = sshll.u32 %s2558_s13, 4  ;;  %s2582_s16 = int_to_ptr.vmem [resolvable:$true] %s1536_s16 }
 0x340   : > { %v1259_v2 = vrot.slane %v1258_v50, 2  ;;  %v1300_v54 = vrot.slane %v1299_v10, 2  ;;  %v1270_v56 = vrot.slane %v1269_v46, 1  ;;  %v1311_v8 = vrot.slane %v1310_v53, 1 }
 0x341   : > { %v2524_v44 = vand.u32 127, %v1313_v43  ;;  %v1419_v16 = vstv %s2531_s9 }
 0x342   : > { %v1260_v58 = vadd.f32 %v1259_v2, %v1258_v50  ;;  %v1301_v59 = vmax.f32 %v1299_v10, %v1300_v54  ;;  %v1271_v11 = vadd.f32 %v1270_v56, %v1269_v46  ;;  %v1312_v14 = vmax.f32 %v1310_v53, %v1311_v8 }
 0x343   : > { %v1340_v3 = vadd.s32 4294967293, %v2524_v44  ;;  %v1359_v50 = vadd.s32 4294967294, %v2524_v44  ;;  %v1364_v10 = vstv %s1674_s10  ;;  %v1386_v54 = vstv %s2526_s18  ;;  %s1522_s10 = scalar_lea.sflag [#allocation5], %s2257_s20  ;;  %s2008_s18 = scalar_lea.vmem %s2582_s16, 2048 }
 0x344   : > { %v1261_v13 = vrot.slane %v1260_v58, 1  ;;  %v1302_v17 = vrot.slane %v1301_v59, 1  ;;  %v1276_v29 = vmul.f32 0.03125, %v1271_v11  ;;  %v1378_v55 = vadd.s32 4294967295, %v2524_v44  ;;  %p2009_p12 = scmp.ne.s32.totalorder %s2582_s16, %s2008_s18 }
 0x345   : > { %vm1341_vm7 = vcmp.ge.s32.totalorder %v1340_v3, 0  ;;  %vm1360_vm8 = vcmp.ge.s32.totalorder %v1359_v50, 0  ;;  %v1383_v56 = vstv %s1676_s24  ;;  %s2091_s24 = smov [#allocation8]  }
 0x346   : > { %v1262_v21 = vadd.f32 %v1261_v13, %v1260_v58  ;;  %v1303_v22 = vmax.f32 %v1301_v59, %v1302_v17  ;;  %v1316_v58 = vstv %s2528_s21  ;;  %vm1379_vm9 = vcmp.ge.s32.totalorder %v1378_v55, 0  ;;  %p2010_p2 = pnand %p2009_p12, %p2666_p0  ;;  %s2012_s21 = sshll.u32 %s2091_s24, 4  ;;  %s2013_s21 = int_to_ptr.vmem [resolvable:$false] %s2012_s21 }
 0x347   : > { %s2014_s9 = scalar_lea.vmem %s2013_s21, 4096  ;;  %p2015_p8 = scmp.lt.s32.totalorder %s2582_s16, %s2013_s21 }
 0x348   : > { %v1275_v9 = vmul.f32 0.03125, %v1262_v21  ;;  %v1335_v27 = vsel %vm1323_vm5, %v1303_v22, %v1334_v25  ;;  %p2011_p7 = pneg %p2010_p2  ;;  %p2016_p9 = scmp.lt.s32.totalorder %s2014_s9, %s2008_s18 }
 0x349   : > { %v1336_v30 = vsel %vm1325_vm6, %v1312_v14, %v1335_v27  ;;  %v1411_v14 = vadd.s32 1, %v2524_v44 }
 0x34a   : > { %1338 = vrot.lane.b32.xlu0 %v1336_v30, %s2085_s12  ;;  %v1324_v33 = vsel %vm1323_vm5, %v1275_v9, %v1322_v31  ;;  %v1401_v36 = vmul.f32 %v1400_v28, %v1336_v30  ;;  %p2017_p10 = por %p2016_p9, %p2015_p8 }
 0x34b   : > { %v1326_v35 = vsel %vm1325_vm6, %v1276_v29, %v1324_v33  ;;  %v1430_v29 = vadd.s32 2, %v2524_v44  ;;  %vm1413_vm10 = vcmp.lt.s32.totalorder %v1411_v14, 128 }
 0x34c   : > { %1328 = vrot.lane.b32.xlu1 %v1326_v35, %s2085_s12  ;;  %v1398_v38 = vmul.f32 %v1397_v12, %v1326_v35  ;;  %s2534_s12 = sld [smem:[#allocation7 + $0x4]]  ;;  %p2018_p1 = pnand %p2017_p10, %p2011_p7 }
 0x34d   : > { %vm1432_vm11 = vcmp.lt.s32.totalorder %v1430_v29, 128 }
 0x34e   : > { %1357 = vrot.lane.b32.xlu0 %v1336_v30, %s2086_s17  ;;  %v2521_v24 = vadd.f32 %v1401_v36, %v1398_v38 }
 0x350   : > { %1355 = vrot.lane.b32.xlu1 %v1326_v35, %s2086_s17  ;;  %s2536_s17 = sld [smem:[#allocation7 + $0x85]] }
 0x352   : > { %1376 = vrot.lane.b32.xlu0 %v1336_v30, %s2087_s5  ;;  %v1416_v21 = vstv %s2534_s12 }
 0x354   : > { %1374 = vrot.lane.b32.xlu1 %v1326_v35, %s2087_s5  ;;  %s2540_s5 = sld [smem:[#allocation7 + $0x5]] }
 0x356   : > { %1409 = vrot.lane.b32.xlu0 %v1336_v30, %s2088_s19  ;;  %v1438_v31 = vstv %s2536_s17 }
 0x358   : > { %1407 = vrot.lane.b32.xlu1 %v1326_v35, %s2088_s19  ;;  %s2543_s19 = sld [smem:[#allocation7 + $0x86]] }
 0x35a   : > { %1428 = vrot.lane.b32.xlu0 %v1336_v30, %s2089_s25  ;;  %v1435_v33 = vstv %s2540_s5 }
 0x35c   : > { %1426 = vrot.lane.b32.xlu1 %v1326_v35, %s2089_s25  ;;  %s1684_s25 = sld [smem:[#allocation7 + $0x6]] }
 0x35e   : > { %1447 = vrot.lane.b32.xlu0 %v1336_v30, %s2090_s30 }
 0x360   : > { %1445 = vrot.lane.b32.xlu1 %v1326_v35, %s2090_s30  ;;  %s1708_s30 = sshll.u32 %s2158_s6, 11 }
 0x361   : > { %s2580_s22 = scalar_lea.hbm %s2648_s7, %s1708_s30 }
 0x3bc   : > { %v1339_v5 = vpop.permute.xlu0 %1338 }
 0x3bd   : > { %v1349_v1 = vmul.f32 %v1348_v6, %v1339_v5 }
 0x3be   : > { %v1329_v45 = vpop.permute.xlu1 %1328 }
 0x3bf   : > { %v1346_v47 = vmul.f32 %v1345_v26, %v1329_v45  ;;  %v1457_v26 = vstv %s2543_s19  ;;  %v1449_v45 = vadd.s32 3, %v2524_v44  ;;  %v1471_v44 = vshrl.u32 %v1313_v43, 7 }
 0x3c0   : > { %v1358_v46 = vpop.permute.xlu0 %1357 }
 0x3c1   : > { %v1350_v51 = vadd.f32 %v1349_v1, %v1346_v47  ;;  %v1368_v53 = vmul.f32 %v1367_v48, %v1358_v46  ;;  %v1454_v1 = vstv %s1684_s25  ;;  %vm1451_vm12 = vcmp.lt.s32.totalorder %v1449_v45, 128 }
 0x3c2   : > { %v1356_v52 = vpop.permute.xlu1 %1355 }
 0x3c3   : > { %v1365_v2 = vmul.f32 %v1364_v10, %v1356_v52  ;;  %v1353_v59 = vsel %vm1341_vm7, %v1350_v51, 0.0 }
 0x3c4   : > { %v1377_v32 = vpop.permute.xlu0 %1376  ;;  %v1354_v18 = vadd.f32 %v1353_v59, %v1316_v58  ;;  %v1472_v58 = vsub.s32 0, %v1471_v44  ;;  %v1484_v59 = vsub.s32 1, %v1471_v44 }
 0x3c5   : > { %v1369_v61 = vadd.f32 %v1368_v53, %v1365_v2  ;;  %v1387_v13 = vmul.f32 %v1386_v54, %v1377_v32 }
 0x3c6   : > { %v1375_v63 = vpop.permute.xlu1 %1374 }
 0x3c7   : > { %v1372_v8 = vsel %vm1360_vm8, %v1369_v61, 0.0  ;;  %v1384_v17 = vmul.f32 %v1383_v56, %v1375_v63  ;;  %v1497_v61 = vsub.s32 2, %v1471_v44  ;;  %v1510_v63 = vsub.s32 3, %v1471_v44 }
 0x3c8   : > { %v1410_v11 = vpop.permute.xlu0 %1409  ;;  %v1373_v23 = vadd.f32 %v1372_v8, %v1354_v18 }
 0x3c9   : > { %v1388_v22 = vadd.f32 %v1387_v13, %v1384_v17  ;;  %v1420_v27 = vmul.f32 %v1419_v16, %v1410_v11 }
 0x3ca   : > { %v1408_v25 = vpop.permute.xlu1 %1407 }
 0x3cb   : > { %v1391_v9 = vsel %vm1379_vm9, %v1388_v22, 0.0  ;;  %v1417_v28 = vmul.f32 %v1416_v21, %v1408_v25 }
 0x3cc   : > { %v1392_v30 = vadd.f32 %v1391_v9, %v1373_v23  ;;  %v1429_v12 = vpop.permute.xlu0 %1428 }
 0x3cd   : > { %v1421_v35 = vadd.f32 %v1420_v27, %v1417_v28  ;;  %v1439_v38 = vmul.f32 %v1438_v31, %v1429_v12 }
 0x3ce   : > { %v1427_v36 = vpop.permute.xlu1 %1426  ;;  %v1406_v5 = vadd.f32 %v2521_v24, %v1392_v30 }
 0x3cf   : > { %v1436_v6 = vmul.f32 %v1435_v33, %v1427_v36  ;;  %v1424_v47 = vsel %vm1413_vm10, %v1421_v35, 0.0 }
 0x3d0   : > { %v1448_v3 = vpop.permute.xlu0 %1447  ;;  %v1425_v52 = vadd.f32 %v1424_v47, %v1406_v5 }
 0x3d1   : > { %v1440_v48 = vadd.f32 %v1439_v38, %v1436_v6  ;;  %v1458_v10 = vmul.f32 %v1457_v26, %v1448_v3 }
 0x3d2   : > { %v1446_v46 = vpop.permute.xlu1 %1445 }
 0x3d3   : > { %v1443_v50 = vsel %vm1432_vm11, %v1440_v48, 0.0  ;;  %v1455_v51 = vmul.f32 %v1454_v1, %v1446_v46 }
 0x3d4   : > { %v1444_v2 = vadd.f32 %v1443_v50, %v1425_v52 }
 0x3d5   : > { %v1459_v53 = vadd.f32 %v1458_v10, %v1455_v51 }
 0x3d7   : > { %v1462_v54 = vsel %vm1451_vm12, %v1459_v53, 0.0 }
 0x3d8   : > { %v1463_v32 = vadd.f32 %v1462_v54, %v1444_v2 }
 0x3da   : > { %v1686_v55 = vmul.f32 -1.442695, %v1463_v32 }
 0x3dc   : > { %1961 = vpow2.f32 %v1686_v55 }
 0x3e9   : > { %v1962_v24 = vpop.eup %1961 }
 0x3ea   : > { %v1467_v56 = vadd.f32 1.0, %v1962_v24 }
 0x3ec   : > { %1963 = vrcp.f32 %v1467_v56 }
 0x3f9   : > { %v1964_v8 = vpop.eup %1963 }
 0x3fa   : > { %v1473_v13 = vrot.slane %v1964_v8, %v1472_v58  ;;  %v1485_v17 = vrot.slane %v1964_v8, %v1484_v59  ;;  %v1498_v18 = vrot.slane %v1964_v8, %v1497_v61  ;;  %v1511_v16 = vrot.slane %v1964_v8, %v1510_v63 }
 0x3fc   : > { %v1474_v43 = vmul.f32 %v1473_v13, %v2435_v39  ;;  %v1475_v11 = vmul.f32 %v1473_v13, %v2444_v42  ;;  %v1476_v21 = vmul.f32 %v1473_v13, %v2449_v7  ;;  %v1477_v22 = vmul.f32 %v1473_v13, %v2465_v49 }
 0x3fd   : > { %v1486_v23 = vmul.f32 %v1485_v17, %v2432_v37  ;;  %v1487_v14 = vmul.f32 %v1485_v17, %v2438_v40  ;;  %v1488_v25 = vmul.f32 %v1485_v17, %v2441_v41  ;;  %v1489_v9 = vmul.f32 %v1485_v17, %v2459_v4 }
 0x3fe   : > { %1478 = vst [vmem:[%s2558_s13] sm:$0xff] %v1474_v43  ;;  %1479 = vst [vmem:[%s2558_s13 + $0x8] sm:$0xff] %v1475_v11  ;;  %v1499_v39 = vmul.f32 %v1498_v18, %v2478_v60  ;;  %v1500_v42 = vmul.f32 %v1498_v18, %v2488_v15  ;;  %v1501_v37 = vmul.f32 %v1498_v18, %v2496_v20 }
 0x3ff   : > { %1480 = vst [vmem:[%s2558_s13 + $0x10] sm:$0xff] %v1476_v21  ;;  %1481 = vst [vmem:[%s2558_s13 + $0x18] sm:$0xff] %v1477_v22  ;;  %v1502_v40 = vmul.f32 %v1498_v18, %v2507_v34  ;;  %v1512_v41 = vmul.f32 %v1511_v16, %v2475_v0  ;;  %v1513_v7 = vmul.f32 %v1511_v16, %v2472_v57 }
 0x400   : > { %1687 = vst [vmem:[%s2558_s13 + $0x20] sm:$0xff] %v1486_v23  ;;  %1688 = vst [vmem:[%s2558_s13 + $0x28] sm:$0xff] %v1487_v14  ;;  %v1514_v4 = vmul.f32 %v1511_v16, %v2481_v62  ;;  %v1515_v49 = vmul.f32 %v1511_v16, %v2491_v19 }
 0x401   : > { %1689 = vst [vmem:[%s2558_s13 + $0x30] sm:$0xff] %v1488_v25  ;;  %1690 = vst [vmem:[%s2558_s13 + $0x38] sm:$0xff] %v1489_v9 }
 0x402   : > { %1691 = vst [vmem:[%s2558_s13 + $0x40] sm:$0xff] %v1499_v39  ;;  %1692 = vst [vmem:[%s2558_s13 + $0x48] sm:$0xff] %v1500_v42 }
 0x403   : > { %1693 = vst [vmem:[%s2558_s13 + $0x50] sm:$0xff] %v1501_v37  ;;  %1694 = vst [vmem:[%s2558_s13 + $0x58] sm:$0xff] %v1502_v40 }
 0x404   : > { %1695 = vst [vmem:[%s2558_s13 + $0x60] sm:$0xff] %v1512_v41  ;;  %1696 = vst [vmem:[%s2558_s13 + $0x68] sm:$0xff] %v1513_v7 }
 0x405   : > { %1697 = vst [vmem:[%s2558_s13 + $0x70] sm:$0xff] %v1514_v4  ;;  %1698 = vst [vmem:[%s2558_s13 + $0x78] sm:$0xff] %v1515_v49 }
 0x406   : > { %2021 = shalt.err (!%p2018_p1)
}
 0x407   : > { %s2022_s12 = scalar_lea.hbm %s2580_s22, 2048  ;;  %s2026_s19 = scalar_lea.hbm %s2648_s7, 4096 }
 0x408   : > { %p2023_p4 = scmp.ne.s32.totalorder %s2580_s22, %s2022_s12  ;;  %p2027_p6 = scmp.lt.s32.totalorder %s2580_s22, %s2648_s7 }
 0x409   : > { %p2028_p13 = scmp.lt.s32.totalorder %s2026_s19, %s2022_s12 }
 0x40a   : > { %p2024_p11 = pnand %p2023_p4, %p2666_p0 }
 0x40b   : > { %p2029_p3 = por %p2028_p13, %p2027_p6 }
 0x40c   : > { %p2025_p5 = pneg %p2024_p11 }
 0x40e   : > { %p2030_p12 = pnand %p2029_p3, %p2025_p5 }
 0x410   : > { %2033 = shalt.err (!%p2030_p12)
}
 0x411   : > { %s2092_s13 = smov 128   ;;  %s2093_s6 = smov 8  }
 0x412   : > { %1831 = dma.vmem_to_hbm [thread:$0]  (%p2666_p0), %s2582_s16, 2048, %s2580_s22, %s1522_s10, %s2092_s13, %s2092_s13, %s2093_s6  }
 0x413 PF: > { %s1551_s23 = sand.u32 1, %s2064_s26   ;;  %p2667_p2 = scmp.ne.s32.totalorder %s2657_s15, 0 }
 0x414   : > { %p2668_p7 = scmp.ge.s32.totalorder %s2076_s29, 2  ;;  %s1552_s18 = scalar_lea.sflag [#allocation5], %s1551_s23 }
 0x416   : > { %p1842_p8 = pnand %p2668_p7, %p2667_p2 }
 0x418   : > { %p1843_p9 = pneg %p1842_p8 }
 0x41a   : > { %2059 = dma.done.wait (%p1843_p9), %s1552_s18, 2048  }
 0x41b   : > { %2061 = vsyncadd (%p1843_p9), %s1552_s18, 4294965248  ;;  %p22_p10 = scmp.ge.s32.totalorder %s2162_s8, 4   ;;  %s2669_s26 = smov %s2068_s27 }
 0x41c   : > { %s2670_s27 = smov %s2072_s28  ;;  %s2671_s28 = smov %s2174_s11 }
 0x41d   : > { %s2672_s29 = smov %s2162_s8  ;;  %24 = sbr.rel (!%p22_p10) target bundleno = 9 (0x9), region = 101 }
 0x422   :  { %1557 = vsyncpa [#allocation4], 1 }
 0x423   :  { %1559 = vsyncpa [#allocation4 + $0x1], 1 }
 0x424   :  { %1560 = vsyncpa [#allocation5], 1 }
 0x425   :  { %1562 = vsyncpa [#allocation5 + $0x1], 1 }
 0x426   :  { %1563 = vsyncpa [#allocation6], 1 }
 0x427   :  { %1565 = vsyncpa [#allocation6 + $0x1], 1 }

</bundles_post_ra>
